<compile_context>
chip_gen: v7x
topology: tpu7x:2x2x1
jax: 0.10.0
libtpu: 0.0.40
codegen_flags: <defaults>
</compile_context>

<pallas_src>
import functools

import jax
import jax.numpy as jnp
from jax.experimental import pallas as pl
from jax.experimental.pallas import tpu as pltpu

_LANES = 128
_VMEM = pl.BlockSpec(memory_space=pltpu.MemorySpace.VMEM)


def _round_up(x, m):
    return (x + m - 1) // m * m


# ----------------------------------------------------------------------------
# Pallas kernels
# ----------------------------------------------------------------------------
def _conv_bn_relu_pool_kernel(a_ref, w_ref, b_ref, o_ref):
    """Fused conv(matmul) + folded-BN bias + ReLU + 2x2 max-pool.

    a_ref: (4, TM, K) bf16 -- the four pool-window corner im2col tiles stacked.
    w_ref: (K, 128) bf16 -- weights with BN scale pre-folded, lanes zero-padded.
    b_ref: (1, 128) f32  -- folded BN bias.
    o_ref: (TM, 128) pooled output tile.
    """
    a = a_ref[...]
    c, tm, k = a.shape
    # One matmul for all four corners: weight pushed to the MXU once per tile.
    y = jnp.dot(a.reshape(c * tm, k), w_ref[...],
                preferred_element_type=jnp.float32)
    y = y.reshape(c, tm, _LANES)
    # Corner max (VPU), then bias + single ReLU (both commute with the max).
    y = jnp.max(y, axis=0) + b_ref[...]
    o_ref[...] = jnp.maximum(y, 0.0).astype(o_ref.dtype)


def _conv_head_kernel(a_ref, w_ref, b_ref, p_ref, w1_ref, b1_ref, w2_ref,
                      b2_ref, o_ref):
    """Stage-3 conv+BN+ReLU+pool fused with GAP + fc1 + ReLU + fc2.

    a_ref: (4, M, K) bf16 stacked corners.      w_ref: (K, 128) bf16.
    b_ref: (1, 128) f32 folded BN bias.         p_ref: (N, M) bf16 GAP matrix.
    w1/b1, w2/b2: fc weights (bf16) / biases (f32), lanes zero-padded.
    o_ref: (N, 128) f32 logits (real classes in the low lanes).
    """
    a = a_ref[...]
    c, m, k = a.shape
    y = jnp.dot(a.reshape(c * m, k), w_ref[...],
                preferred_element_type=jnp.float32)
    y = y.reshape(c, m, _LANES)
    y = jnp.maximum(jnp.max(y, axis=0) + b_ref[...], 0.0)        # (M, 128) f32
    # Global average pool as a tiny pooling-matrix matmul.
    gap = jnp.dot(p_ref[...], y.astype(jnp.bfloat16),
                  preferred_element_type=jnp.float32)            # (N, 128)
    h = jnp.dot(gap.astype(jnp.bfloat16), w1_ref[...],
                preferred_element_type=jnp.float32) + b1_ref[...]
    h = jnp.maximum(h, 0.0)
    # TODO(synk): Dropout(0.3) is eval-mode identity; training-mode masking
    # is not implemented.
    out = jnp.dot(h.astype(jnp.bfloat16), w2_ref[...],
                  preferred_element_type=jnp.float32) + b2_ref[...]
    o_ref[...] = out.astype(o_ref.dtype)


# ----------------------------------------------------------------------------
# Glue: im2col, pooling-corner split, weight packing
# ----------------------------------------------------------------------------
def _im2col(x, kh, kw, ph, pw, cin):
    # (N,H,W,C) -> (N,H,W,kh*kw*cin), 'same' output, channel innermost.
    N, H, W, _ = x.shape
    xp = jnp.pad(x[..., :cin], ((0, 0), (ph, ph), (pw, pw), (0, 0)))
    cols = [xp[:, dh:dh + H, dw:dw + W, :]
            for dh in range(kh) for dw in range(kw)]
    return jnp.concatenate(cols, axis=-1)


def _stacked_corners(x, kh, kw, ph, pw, cin):
    # 2x2/stride-2 pooling windows on the conv output == on the patch rows.
    patches = _im2col(x, kh, kw, ph, pw, cin)
    N, H, W, K = patches.shape
    m = N * (H // 2) * (W // 2)
    corners = [patches[:, p::2, q::2, :].reshape(m, K)
               for p in (0, 1) for q in (0, 1)]
    return jnp.stack(corners, axis=0)                     # (4, M, K)


def _pack_weight(w_mat, scale, bias, kp):
    # Fold BN scale into the weights in f32, pad K rows / 128 lanes, cast bf16.
    K, cout = w_mat.shape
    w_pad = jnp.zeros((kp, _LANES), jnp.float32)
    w_pad = w_pad.at[:K, :cout].set(w_mat * scale[None, :]).astype(jnp.bfloat16)
    b_pad = jnp.zeros((1, _LANES), jnp.float32).at[0, :cout].set(bias)
    return w_pad, b_pad


# ----------------------------------------------------------------------------
# Stage wrappers
# ----------------------------------------------------------------------------
def conv_bn_relu_pool(x, w_mat, scale, bias, kh, kw, ph, pw, *, cin,
                      out_dtype=jnp.bfloat16):
    """x: NHWC (only the first `cin` channels are real).
    Returns (N, H/2, W/2, 128) with real output channels in the low lanes."""
    N, H, W, _ = x.shape
    K, _ = w_mat.shape
    assert K == kh * kw * cin

    corners = _stacked_corners(x, kh, kw, ph, pw, cin)    # (4, M, K)
    m = corners.shape[1]
    kp = _round_up(K, _LANES) if K < _LANES else K        # lane-dense stage 1

    # Big tiles: single grid step for small M, 512-row tiles otherwise.
    if m <= 512:
        tm = _round_up(m, 8)
    else:
        tm = 512
    mp = _round_up(m, tm)
    corners = jnp.pad(corners, ((0, 0), (0, mp - m), (0, kp - K)))
    corners = corners.astype(jnp.bfloat16)

    w_pad, b_pad = _pack_weight(w_mat, scale, bias, kp)

    grid = (mp // tm,)
    sem = "parallel" if (grid[0] > 1 and tm >= 256) else "arbitrary"
    out = pl.pallas_call(
        _conv_bn_relu_pool_kernel,
        out_shape=jax.ShapeDtypeStruct((mp, _LANES), out_dtype),
        grid=grid,
        in_specs=[pl.BlockSpec((4, tm, kp), lambda i: (0, i, 0)),
                  pl.BlockSpec((kp, _LANES), lambda i: (0, 0)),
                  pl.BlockSpec((1, _LANES), lambda i: (0, 0))],
        out_specs=pl.BlockSpec((tm, _LANES), lambda i: (i, 0)),
        compiler_params=pltpu.CompilerParams(dimension_semantics=(sem,)),
    )(corners, w_pad, b_pad)
    return out[:m].reshape(N, H // 2, W // 2, _LANES)


def conv_bn_relu_pool_head(x, w_mat, scale, bias, fc1_w, fc1_b, fc2_w, fc2_b,
                           *, cin, num_classes):
    """Stage-3 conv + BN + ReLU + pool fused with GAP + fc1 + ReLU + fc2."""
    N, H, W, _ = x.shape
    K, _ = w_mat.shape
    hw = (H // 2) * (W // 2)

    corners = _stacked_corners(x, 3, 3, 1, 1, cin)        # (4, M, K)
    m = corners.shape[1]                                  # N * hw
    mp = _round_up(m, 8)
    corners = jnp.pad(corners, ((0, 0), (0, mp - m), (0, 0)))
    corners = corners.astype(jnp.bfloat16)

    w_pad, b_pad = _pack_weight(w_mat, scale, bias, K)

    # GAP pooling matrix: row n averages its hw consecutive pooled rows.
    p = jnp.zeros((N, mp), jnp.float32)
    p = p.at[:, :m].set(
        jnp.repeat(jnp.eye(N, dtype=jnp.float32), hw, axis=1) / float(hw))
    p = p.astype(jnp.bfloat16)

    hidden = fc1_w.shape[0]
    w1 = jnp.zeros((_LANES, hidden), jnp.float32)
    w1 = w1.at[:fc1_w.shape[1], :].set(fc1_w.T).astype(jnp.bfloat16)
    b1 = fc1_b.reshape(1, hidden).astype(jnp.float32)
    w2 = jnp.zeros((hidden, _LANES), jnp.float32)
    w2 = w2.at[:, :num_classes].set(fc2_w.T).astype(jnp.bfloat16)
    b2 = jnp.zeros((1, _LANES), jnp.float32).at[0, :num_classes].set(fc2_b)

    out = pl.pallas_call(
        _conv_head_kernel,
        out_shape=jax.ShapeDtypeStruct((N, _LANES), jnp.float32),
        in_specs=[_VMEM] * 8,
        out_specs=_VMEM,
    )(corners, w_pad, b_pad, p, w1, b1, w2, b2)
    return out[:, :num_classes]


# ----------------------------------------------------------------------------
# Parameter folding (BN eval mode) and branch merging
# ----------------------------------------------------------------------------
def _fold_bn(conv_b, bn, eps):
    gamma, beta, mean, var = bn
    scale = gamma / jnp.sqrt(var + eps)
    bias = (conv_b - mean) * scale + beta
    return scale, bias


def _conv_weight_matrix(conv_w):
    # (Cout, Cin, kh, kw) -> (kh*kw*Cin, Cout), matching im2col patch order.
    cout, cin, kh, kw = conv_w.shape
    return jnp.transpose(conv_w, (2, 3, 1, 0)).reshape(kh * kw * cin, cout)


def _merged_conv1_params(params, eps):
    # Pack the 1x5 (36 ch) and 5x1 (12 ch) branches into one 5x5x3 -> 48 matmul.
    w_h = jnp.transpose(params["conv1_w"], (2, 3, 1, 0))    # (1,5,3,36)
    w_v = jnp.transpose(params["conv1v_w"], (2, 3, 1, 0))   # (5,1,3,12)
    w = jnp.zeros((5, 5, 3, 48), jnp.float32)
    w = w.at[2:3, :, :, :36].set(w_h)   # center row  == 1x5 conv, pad (0,2)
    w = w.at[:, 2:3, :, 36:].set(w_v)   # center col  == 5x1 conv, pad (2,0)
    s_h, b_h = _fold_bn(params["conv1_b"], params["bn1"], eps)
    s_v, b_v = _fold_bn(params["conv1v_b"], params["bn1v"], eps)
    return (w.reshape(75, 48),
            jnp.concatenate([s_h, s_v]),
            jnp.concatenate([b_h, b_v]))


# ----------------------------------------------------------------------------
# Forward pass (mirrors StegoNet.forward, eval mode)
# ----------------------------------------------------------------------------
def stego_net_forward(params, x_nchw, *, num_classes=9, eps=1e-5):
    # NCHW -> NHWC (glue): channels on the lane axis.
    x = jnp.transpose(x_nchw, (0, 2, 3, 1)).astype(jnp.float32)

    # PreprocessLSBLayer(top_fraction=1.0): LSB plane of (x*255) truncated
    # toward zero (matches .to(torch.uint8) for inputs in [0, 1)).  Computed
    # once on the compact image; corners downstream carry bf16 {0,1} values.
    x = ((x * 255.0).astype(jnp.int32) & 1).astype(jnp.float32)

    # Stage 1: merged (1x5 | 5x1) conv + BN + ReLU + 2x2 max-pool.
    w1, s1, b1 = _merged_conv1_params(params, eps)
    x = conv_bn_relu_pool(x, w1, s1, b1, 5, 5, 2, 2, cin=3,
                          out_dtype=jnp.bfloat16)          # (N,8,8,128) ch 0..47

    # Stage 2: conv2 3x3 + BN + ReLU + pool.
    s2, b2 = _fold_bn(params["conv2_b"], params["bn2"], eps)
    x = conv_bn_relu_pool(x, _conv_weight_matrix(params["conv2_w"]), s2, b2,
                          3, 3, 1, 1, cin=48,
                          out_dtype=jnp.bfloat16)          # (N,4,4,128) ch 0..47

    # Stage 3 + head: conv3 3x3 + BN + ReLU + pool + GAP + fc1 + ReLU + fc2,
    # all in one kernel (Dropout(0.3) is eval-mode identity).
    s3, b3 = _fold_bn(params["conv3_b"], params["bn3"], eps)
    return conv_bn_relu_pool_head(
        x, _conv_weight_matrix(params["conv3_w"]), s3, b3,
        params["fc1_w"], params["fc1_b"], params["fc2_w"], params["fc2_b"],
        cin=48, num_classes=num_classes)


# ----------------------------------------------------------------------------
# Parameters (deterministic, synthetic)
# ----------------------------------------------------------------------------
def init_params(key, num_classes=9):
    counter = [0]

    def nk():
        counter[0] += 1
        return jax.random.fold_in(key, counter[0])

    def w(shape, scale=0.05):
        return scale * jax.random.normal(nk(), shape, jnp.float32)

    def bn(c):
        gamma = 1.0 + 0.1 * jax.random.normal(nk(), (c,), jnp.float32)
        beta = 0.1 * jax.random.normal(nk(), (c,), jnp.float32)
        mean = 0.1 * jax.random.normal(nk(), (c,), jnp.float32)
        var = 1.0 + 0.1 * jax.random.uniform(nk(), (c,), jnp.float32)
        return (gamma, beta, mean, var)

    p = {}
    p["conv1_w"] = w((36, 3, 1, 5));    p["conv1_b"] = w((36,))
    p["bn1"] = bn(36)
    p["conv1v_w"] = w((12, 3, 5, 1));   p["conv1v_b"] = w((12,))
    p["bn1v"] = bn(12)
    p["conv2_w"] = w((48, 48, 3, 3));   p["conv2_b"] = w((48,))
    p["bn2"] = bn(48)
    p["conv3_w"] = w((96, 48, 3, 3));   p["conv3_b"] = w((96,))
    p["bn3"] = bn(96)
    p["fc1_w"] = w((128, 96));          p["fc1_b"] = w((128,))
    p["fc2_w"] = w((num_classes, 128)); p["fc2_b"] = w((num_classes,))
    return p


if __name__ == "__main__":
    key = jax.random.PRNGKey(0)
    k_param, k_input = jax.random.split(key)

    params = init_params(k_param, num_classes=9)
    # Image-like input in [0, 1), PyTorch NCHW convention: (batch=2, C=3, 16, 16)
    x = jax.random.uniform(k_input, (2, 3, 16, 16), jnp.float32)

    fwd = jax.jit(functools.partial(stego_net_forward, num_classes=9))
    out = fwd(params, x)
    out = jax.block_until_ready(out)
    assert out.shape == (2, 9), out.shape
    print("KERNEL_OK")
</pallas_src>

<mosaic_0001>
module attributes {stable_mosaic.version = 11 : i64} {
  func.func @_conv_bn_relu_pool_kernel(%arg0: i32, %arg1: memref<4x128x128xbf16, #tpu.memory_space<vmem>>, %arg2: memref<128x128xbf16, #tpu.memory_space<vmem>>, %arg3: memref<1x128xf32, #tpu.memory_space<vmem>>, %arg4: memref<128x128xbf16, #tpu.memory_space<vmem>>) attributes {dimension_semantics = [#tpu.dimension_semantics<arbitrary>], iteration_bounds = array<i64: 1>, scalar_prefetch = 0 : i64, scratch_operands = 0 : i64, tpu.core_type = #tpu.core_type<tc>, window_params = [{transform_indices = @transform_0, window_bounds = array<i64: 4, 128, 128>}, {pipeline_mode = #tpu.pipeline_mode<synchronous>, transform_indices = @transform_1, window_bounds = array<i64: 128, 128>}, {pipeline_mode = #tpu.pipeline_mode<synchronous>, transform_indices = @transform_2, window_bounds = array<i64: 1, 128>}, {transform_indices = @transform_3, window_bounds = array<i64: 128, 128>}]} {
    %c0 = arith.constant 0 : index
    %c0_0 = arith.constant 0 : index
    %c0_1 = arith.constant 0 : index
    %0 = vector.load %arg1[%c0, %c0_0, %c0_1] : memref<4x128x128xbf16, #tpu.memory_space<vmem>>, vector<4x128x128xbf16>
    %1 = vector.shape_cast %0 : vector<4x128x128xbf16> to vector<512x128xbf16>
    %c0_2 = arith.constant 0 : index
    %c0_3 = arith.constant 0 : index
    %2 = vector.load %arg2[%c0_2, %c0_3] : memref<128x128xbf16, #tpu.memory_space<vmem>>, vector<128x128xbf16>
    %cst = arith.constant dense<0.000000e+00> : vector<512x128xf32>
    %3 = tpu.matmul %1, %2, %cst {dimension_numbers = #tpu.dot_dimension_numbers<[1], [0], [0], [1], [0, 0, 1, 1], [], []>} : vector<512x128xbf16>, vector<128x128xbf16>, vector<512x128xf32> -> vector<512x128xf32>
    %4 = vector.shape_cast %3 : vector<512x128xf32> to vector<4x128x128xf32>
    %cst_4 = arith.constant dense<0xFF800000> : vector<128x128xf32>
    %5 = vector.multi_reduction <maximumf>, %4, %cst_4 [0] : vector<4x128x128xf32> to vector<128x128xf32>
    %c0_5 = arith.constant 0 : index
    %c0_6 = arith.constant 0 : index
    %6 = vector.load %arg3[%c0_5, %c0_6] : memref<1x128xf32, #tpu.memory_space<vmem>>, vector<1x128xf32>
    %7 = vector.broadcast %6 : vector<1x128xf32> to vector<128x128xf32>
    %8 = arith.addf %5, %7 : vector<128x128xf32>
    %cst_7 = arith.constant 0.000000e+00 : f32
    %9 = vector.broadcast %cst_7 : f32 to vector<128x128xf32>
    %10 = arith.maximumf %8, %9 : vector<128x128xf32>
    %11 = arith.truncf %10 : vector<128x128xf32> to vector<128x128xbf16>
    %c0_8 = arith.constant 0 : index
    %c0_9 = arith.constant 0 : index
    %12 = vector.load %arg4[%c0_8, %c0_9] : memref<128x128xbf16, #tpu.memory_space<vmem>>, vector<128x128xbf16>
    tpu.vector_store %arg4[%c0_8, %c0_9], %11 {strides = array<i32>} : memref<128x128xbf16, #tpu.memory_space<vmem>>, vector<128x128xbf16>,
    return
  }
  func.func @transform_0(%arg0: i32) -> (i32, i32, i32) {
    %c0_i32 = arith.constant 0 : i32
    %c0_i32_0 = arith.constant 0 : i32
    %c0_i32_1 = arith.constant 0 : i32
    return %c0_i32, %arg0, %c0_i32_0 : i32, i32, i32
  }
  func.func @transform_1(%arg0: i32) -> (i32, i32) {
    %c0_i32 = arith.constant 0 : i32
    %c0_i32_0 = arith.constant 0 : i32
    %c0_i32_1 = arith.constant 0 : i32
    return %c0_i32, %c0_i32_0 : i32, i32
  }
  func.func @transform_2(%arg0: i32) -> (i32, i32) {
    %c0_i32 = arith.constant 0 : i32
    %c0_i32_0 = arith.constant 0 : i32
    %c0_i32_1 = arith.constant 0 : i32
    return %c0_i32, %c0_i32_0 : i32, i32
  }
  func.func @transform_3(%arg0: i32) -> (i32, i32) {
    %c0_i32 = arith.constant 0 : i32
    %c0_i32_0 = arith.constant 0 : i32
    return %arg0, %c0_i32 : i32, i32
  }
}

module attributes {stable_mosaic.version = 11 : i64} {
  func.func @_conv_bn_relu_pool_kernel(%arg0: i32, %arg1: memref<4x32x432xbf16, #tpu.memory_space<vmem>>, %arg2: memref<432x128xbf16, #tpu.memory_space<vmem>>, %arg3: memref<1x128xf32, #tpu.memory_space<vmem>>, %arg4: memref<32x128xbf16, #tpu.memory_space<vmem>>) attributes {dimension_semantics = [#tpu.dimension_semantics<arbitrary>], iteration_bounds = array<i64: 1>, scalar_prefetch = 0 : i64, scratch_operands = 0 : i64, tpu.core_type = #tpu.core_type<tc>, window_params = [{transform_indices = @transform_0, window_bounds = array<i64: 4, 32, 432>}, {pipeline_mode = #tpu.pipeline_mode<synchronous>, transform_indices = @transform_1, window_bounds = array<i64: 432, 128>}, {pipeline_mode = #tpu.pipeline_mode<synchronous>, transform_indices = @transform_2, window_bounds = array<i64: 1, 128>}, {transform_indices = @transform_3, window_bounds = array<i64: 32, 128>}]} {
    %c0 = arith.constant 0 : index
    %c0_0 = arith.constant 0 : index
    %c0_1 = arith.constant 0 : index
    %0 = vector.load %arg1[%c0, %c0_0, %c0_1] : memref<4x32x432xbf16, #tpu.memory_space<vmem>>, vector<4x32x432xbf16>
    %1 = vector.shape_cast %0 : vector<4x32x432xbf16> to vector<128x432xbf16>
    %c0_2 = arith.constant 0 : index
    %c0_3 = arith.constant 0 : index
    %2 = vector.load %arg2[%c0_2, %c0_3] : memref<432x128xbf16, #tpu.memory_space<vmem>>, vector<432x128xbf16>
    %cst = arith.constant dense<0.000000e+00> : vector<128x128xf32>
    %3 = tpu.matmul %1, %2, %cst {dimension_numbers = #tpu.dot_dimension_numbers<[1], [0], [0], [1], [0, 0, 1, 1], [], []>} : vector<128x432xbf16>, vector<432x128xbf16>, vector<128x128xf32> -> vector<128x128xf32>
    %4 = vector.shape_cast %3 : vector<128x128xf32> to vector<4x32x128xf32>
    %cst_4 = arith.constant dense<0xFF800000> : vector<32x128xf32>
    %5 = vector.multi_reduction <maximumf>, %4, %cst_4 [0] : vector<4x32x128xf32> to vector<32x128xf32>
    %c0_5 = arith.constant 0 : index
    %c0_6 = arith.constant 0 : index
    %6 = vector.load %arg3[%c0_5, %c0_6] : memref<1x128xf32, #tpu.memory_space<vmem>>, vector<1x128xf32>
    %7 = vector.broadcast %6 : vector<1x128xf32> to vector<32x128xf32>
    %8 = arith.addf %5, %7 : vector<32x128xf32>
    %cst_7 = arith.constant 0.000000e+00 : f32
    %9 = vector.broadcast %cst_7 : f32 to vector<32x128xf32>
    %10 = arith.maximumf %8, %9 : vector<32x128xf32>
    %11 = arith.truncf %10 : vector<32x128xf32> to vector<32x128xbf16>
    %c0_8 = arith.constant 0 : index
    %c0_9 = arith.constant 0 : index
    %12 = vector.load %arg4[%c0_8, %c0_9] : memref<32x128xbf16, #tpu.memory_space<vmem>>, vector<32x128xbf16>
    tpu.vector_store %arg4[%c0_8, %c0_9], %11 {strides = array<i32>} : memref<32x128xbf16, #tpu.memory_space<vmem>>, vector<32x128xbf16>,
    return
  }
  func.func @transform_0(%arg0: i32) -> (i32, i32, i32) {
    %c0_i32 = arith.constant 0 : i32
    %c0_i32_0 = arith.constant 0 : i32
    %c0_i32_1 = arith.constant 0 : i32
    return %c0_i32, %arg0, %c0_i32_0 : i32, i32, i32
  }
  func.func @transform_1(%arg0: i32) -> (i32, i32) {
    %c0_i32 = arith.constant 0 : i32
    %c0_i32_0 = arith.constant 0 : i32
    %c0_i32_1 = arith.constant 0 : i32
    return %c0_i32, %c0_i32_0 : i32, i32
  }
  func.func @transform_2(%arg0: i32) -> (i32, i32) {
    %c0_i32 = arith.constant 0 : i32
    %c0_i32_0 = arith.constant 0 : i32
    %c0_i32_1 = arith.constant 0 : i32
    return %c0_i32, %c0_i32_0 : i32, i32
  }
  func.func @transform_3(%arg0: i32) -> (i32, i32) {
    %c0_i32 = arith.constant 0 : i32
    %c0_i32_0 = arith.constant 0 : i32
    return %arg0, %c0_i32 : i32, i32
  }
}

module attributes {stable_mosaic.version = 11 : i64} {
  func.func @_conv_head_kernel(%arg0: memref<4x8x432xbf16, #tpu.memory_space<vmem>>, %arg1: memref<432x128xbf16, #tpu.memory_space<vmem>>, %arg2: memref<1x128xf32, #tpu.memory_space<vmem>>, %arg3: memref<2x8xbf16, #tpu.memory_space<vmem>>, %arg4: memref<128x128xbf16, #tpu.memory_space<vmem>>, %arg5: memref<1x128xf32, #tpu.memory_space<vmem>>, %arg6: memref<128x128xbf16, #tpu.memory_space<vmem>>, %arg7: memref<1x128xf32, #tpu.memory_space<vmem>>, %arg8: memref<2x128xf32, #tpu.memory_space<vmem>>) attributes {dimension_semantics = [], scalar_prefetch = 0 : i64, scratch_operands = 0 : i64, tpu.core_type = #tpu.core_type<tc>} {
    %c0 = arith.constant 0 : index
    %c0_0 = arith.constant 0 : index
    %c0_1 = arith.constant 0 : index
    %0 = vector.load %arg0[%c0, %c0_0, %c0_1] : memref<4x8x432xbf16, #tpu.memory_space<vmem>>, vector<4x8x432xbf16>
    %1 = vector.shape_cast %0 : vector<4x8x432xbf16> to vector<32x432xbf16>
    %c0_2 = arith.constant 0 : index
    %c0_3 = arith.constant 0 : index
    %2 = vector.load %arg1[%c0_2, %c0_3] : memref<432x128xbf16, #tpu.memory_space<vmem>>, vector<432x128xbf16>
    %cst = arith.constant dense<0.000000e+00> : vector<32x128xf32>
    %3 = tpu.matmul %1, %2, %cst {dimension_numbers = #tpu.dot_dimension_numbers<[1], [0], [0], [1], [0, 0, 1, 1], [], []>} : vector<32x432xbf16>, vector<432x128xbf16>, vector<32x128xf32> -> vector<32x128xf32>
    %4 = vector.shape_cast %3 : vector<32x128xf32> to vector<4x8x128xf32>
    %cst_4 = arith.constant dense<0xFF800000> : vector<8x128xf32>
    %5 = vector.multi_reduction <maximumf>, %4, %cst_4 [0] : vector<4x8x128xf32> to vector<8x128xf32>
    %c0_5 = arith.constant 0 : index
    %c0_6 = arith.constant 0 : index
    %6 = vector.load %arg2[%c0_5, %c0_6] : memref<1x128xf32, #tpu.memory_space<vmem>>, vector<1x128xf32>
    %7 = vector.broadcast %6 : vector<1x128xf32> to vector<8x128xf32>
    %8 = arith.addf %5, %7 : vector<8x128xf32>
    %cst_7 = arith.constant 0.000000e+00 : f32
    %9 = vector.broadcast %cst_7 : f32 to vector<8x128xf32>
    %10 = arith.maximumf %8, %9 : vector<8x128xf32>
    %c0_8 = arith.constant 0 : index
    %c0_9 = arith.constant 0 : index
    %11 = vector.load %arg3[%c0_8, %c0_9] : memref<2x8xbf16, #tpu.memory_space<vmem>>, vector<2x8xbf16>
    %12 = arith.truncf %10 : vector<8x128xf32> to vector<8x128xbf16>
    %cst_10 = arith.constant dense<0.000000e+00> : vector<2x128xf32>
    %13 = tpu.matmul %11, %12, %cst_10 {dimension_numbers = #tpu.dot_dimension_numbers<[1], [0], [0], [1], [0, 0, 1, 1], [], []>} : vector<2x8xbf16>, vector<8x128xbf16>, vector<2x128xf32> -> vector<2x128xf32>
    %14 = arith.truncf %13 : vector<2x128xf32> to vector<2x128xbf16>
    %c0_11 = arith.constant 0 : index
    %c0_12 = arith.constant 0 : index
    %15 = vector.load %arg4[%c0_11, %c0_12] : memref<128x128xbf16, #tpu.memory_space<vmem>>, vector<128x128xbf16>
    %cst_13 = arith.constant dense<0.000000e+00> : vector<2x128xf32>
    %16 = tpu.matmul %14, %15, %cst_13 {dimension_numbers = #tpu.dot_dimension_numbers<[1], [0], [0], [1], [0, 0, 1, 1], [], []>} : vector<2x128xbf16>, vector<128x128xbf16>, vector<2x128xf32> -> vector<2x128xf32>
    %c0_14 = arith.constant 0 : index
    %c0_15 = arith.constant 0 : index
    %17 = vector.load %arg5[%c0_14, %c0_15] : memref<1x128xf32, #tpu.memory_space<vmem>>, vector<1x128xf32>
    %18 = vector.broadcast %17 : vector<1x128xf32> to vector<2x128xf32>
    %19 = arith.addf %16, %18 : vector<2x128xf32>
    %cst_16 = arith.constant 0.000000e+00 : f32
    %20 = vector.broadcast %cst_16 : f32 to vector<2x128xf32>
    %21 = arith.maximumf %19, %20 : vector<2x128xf32>
    %22 = arith.truncf %21 : vector<2x128xf32> to vector<2x128xbf16>
    %c0_17 = arith.constant 0 : index
    %c0_18 = arith.constant 0 : index
    %23 = vector.load %arg6[%c0_17, %c0_18] : memref<128x128xbf16, #tpu.memory_space<vmem>>, vector<128x128xbf16>
    %cst_19 = arith.constant dense<0.000000e+00> : vector<2x128xf32>
    %24 = tpu.matmul %22, %23, %cst_19 {dimension_numbers = #tpu.dot_dimension_numbers<[1], [0], [0], [1], [0, 0, 1, 1], [], []>} : vector<2x128xbf16>, vector<128x128xbf16>, vector<2x128xf32> -> vector<2x128xf32>
    %c0_20 = arith.constant 0 : index
    %c0_21 = arith.constant 0 : index
    %25 = vector.load %arg7[%c0_20, %c0_21] : memref<1x128xf32, #tpu.memory_space<vmem>>, vector<1x128xf32>
    %26 = vector.broadcast %25 : vector<1x128xf32> to vector<2x128xf32>
    %27 = arith.addf %24, %26 : vector<2x128xf32>
    %c0_22 = arith.constant 0 : index
    %c0_23 = arith.constant 0 : index
    %28 = vector.load %arg8[%c0_22, %c0_23] : memref<2x128xf32, #tpu.memory_space<vmem>>, vector<2x128xf32>
    tpu.vector_store %arg8[%c0_22, %c0_23], %27 {strides = array<i32>} : memref<2x128xf32, #tpu.memory_space<vmem>>, vector<2x128xf32>,
    return
  }
}

</mosaic_0001>

<bundles_post_ra>
// kernel: stego_net_forward.3
= control target key start
LH: loop header
LB: loop body
LE: loop exit
PB: predicated region body
PF: predicated region fallthrough
CT: control target
= control target key end

     0   :  { %s1342_s1 = inlined_call_operand.vmem [shape: bf16[128,128], index: 1, kind: input, shape index: {}]   ;;  %s1343_s0 = inlined_call_operand.vmem [shape: bf16[4,128,128], index: 0, kind: input, shape index: {}]   ;;  %s1344_s2 = inlined_call_operand.vmem [shape: f32[1,128], index: 2, kind: input, shape index: {}]   ;;  %s1345_s3 = inlined_call_operand.vmem [shape: bf16[128,128], index: 3, kind: output, shape index: {}]  }
   0x1   :  { %v1051_v0 = vld [vmem:[%s1342_s1] sm:$0xff]   ;;  %v1052_v1 = vld [vmem:[%s1342_s1 + $0x8] sm:$0xff]   ;;  %v1053_v2 = vld [vmem:[%s1342_s1 + $0x10] sm:$0xff]  }
   0x2   :  { %955 = vmatprep.subr.bf16.mxu0 %v1051_v0  ;;  %1035 = vmatprep.subr.bf16.mxu1 %v1051_v0  ;;  %v1054_v3 = vld [vmem:[%s1342_s1 + $0x18] sm:$0xff]   ;;  %v1059_v4 = vld [vmem:[%s1343_s0] sm:$0xff]   ;;  %v1056_v7 = vld [vmem:[%s1342_s1 + $0x28] sm:$0xff]  }
   0x3   :  { %956 = vmatpush3.bf16.msra.mxu0 %v1051_v0  ;;  %1043 = vmatpush3.bf16.msra.mxu1 %v1051_v0  ;;  %v1061_v5 = vld [vmem:[%s1343_s0 + $0x80] sm:$0xff]   ;;  %v1057_v8 = vld [vmem:[%s1342_s1 + $0x30] sm:$0xff]   ;;  %v1058_v9 = vld [vmem:[%s1342_s1 + $0x38] sm:$0xff]  }
   0x4   :  { %957 = vmatprep.subr.bf16.mxu0 %v1052_v1  ;;  %1036 = vmatprep.subr.bf16.mxu1 %v1052_v1  ;;  %v1055_v6 = vld [vmem:[%s1342_s1 + $0x20] sm:$0xff]   ;;  %v1060_v10 = vld [vmem:[%s1343_s0 + $0x8] sm:$0xff]   ;;  %v1063_v12 = vld [vmem:[%s1343_s0 + $0x10] sm:$0xff]  }
   0x5   :  { %971 = vmatprep.mubr.bf16.mxu0 %v1059_v4  ;;  %1003 = vmatprep.mubr.bf16.mxu1 %v1061_v5  ;;  %v1062_v11 = vld [vmem:[%s1343_s0 + $0x88] sm:$0xff]   ;;  %v1065_v13 = vld [vmem:[%s1343_s0 + $0x90] sm:$0xff]   ;;  %v1064_v14 = vld [vmem:[%s1343_s0 + $0x18] sm:$0xff]  }
   0x6   :  { %v1066_v15 = vld [vmem:[%s1343_s0 + $0x98] sm:$0xff]   ;;  %v1067_v16 = vld [vmem:[%s1343_s0 + $0x20] sm:$0xff]   ;;  %v1068_v18 = vld [vmem:[%s1343_s0 + $0x28] sm:$0xff]  }
   0x7   :  { %958 = vmatpush3.bf16.msra.mxu0 %v1052_v1  ;;  %1044 = vmatpush3.bf16.msra.mxu1 %v1052_v1  ;;  %v1069_v17 = vld [vmem:[%s1343_s0 + $0xa0] sm:$0xff]   ;;  %v1070_v19 = vld [vmem:[%s1343_s0 + $0xa8] sm:$0xff]   ;;  %v1071_v20 = vld [vmem:[%s1343_s0 + $0x30] sm:$0xff]  }
   0x8   :  { %959 = vmatprep.subr.bf16.mxu0 %v1053_v2  ;;  %1037 = vmatprep.subr.bf16.mxu1 %v1053_v2  ;;  %v1073_v21 = vld [vmem:[%s1343_s0 + $0xb0] sm:$0xff]   ;;  %v1072_v22 = vld [vmem:[%s1343_s0 + $0x38] sm:$0xff]   ;;  %v1075_v24 = vld [vmem:[%s1343_s0 + $0x40] sm:$0xff]  }
   0x9   :  { %v1074_v23 = vld [vmem:[%s1343_s0 + $0xb8] sm:$0xff]   ;;  %v1077_v25 = vld [vmem:[%s1343_s0 + $0xc0] sm:$0xff]   ;;  %v1076_v26 = vld [vmem:[%s1343_s0 + $0x48] sm:$0xff]  }
   0xa   :  { %v1078_v27 = vld [vmem:[%s1343_s0 + $0xc8] sm:$0xff]   ;;  %v1079_v28 = vld [vmem:[%s1343_s0 + $0x50] sm:$0xff]   ;;  %v1080_v30 = vld [vmem:[%s1343_s0 + $0x58] sm:$0xff]  }
   0xb   :  { %960 = vmatpush3.bf16.msra.mxu0 %v1053_v2  ;;  %1045 = vmatpush3.bf16.msra.mxu1 %v1053_v2  ;;  %v1081_v29 = vld [vmem:[%s1343_s0 + $0xd0] sm:$0xff]   ;;  %v1082_v31 = vld [vmem:[%s1343_s0 + $0xd8] sm:$0xff]   ;;  %v1083_v32 = vld [vmem:[%s1343_s0 + $0x60] sm:$0xff]  }
   0xc   :  { %961 = vmatprep.subr.bf16.mxu0 %v1054_v3  ;;  %1038 = vmatprep.subr.bf16.mxu1 %v1054_v3  ;;  %v1085_v33 = vld [vmem:[%s1343_s0 + $0xe0] sm:$0xff]   ;;  %v1084_v34 = vld [vmem:[%s1343_s0 + $0x68] sm:$0xff]   ;;  %v1087_v36 = vld [vmem:[%s1343_s0 + $0x70] sm:$0xff]  }
   0xd   :  { %v1086_v35 = vld [vmem:[%s1343_s0 + $0xe8] sm:$0xff]   ;;  %v1089_v37 = vld [vmem:[%s1343_s0 + $0xf0] sm:$0xff]   ;;  %v1088_v38 = vld [vmem:[%s1343_s0 + $0x78] sm:$0xff]  }
   0xe   :  { %v1090_v39 = vld [vmem:[%s1343_s0 + $0xf8] sm:$0xff]  }
   0xf   :  { %962 = vmatpush3.bf16.msra.mxu0 %v1054_v3  ;;  %1046 = vmatpush3.bf16.msra.mxu1 %v1054_v3 }
  0x10   :  { %963 = vmatprep.subr.bf16.mxu0 %v1055_v6  ;;  %1039 = vmatprep.subr.bf16.mxu1 %v1055_v6 }
  0x13   :  { %964 = vmatpush3.bf16.msra.mxu0 %v1055_v6  ;;  %1047 = vmatpush3.bf16.msra.mxu1 %v1055_v6 }
  0x14   :  { %965 = vmatprep.subr.bf16.mxu0 %v1056_v7  ;;  %1040 = vmatprep.subr.bf16.mxu1 %v1056_v7 }
  0x17   :  { %966 = vmatpush3.bf16.msra.mxu0 %v1056_v7  ;;  %1048 = vmatpush3.bf16.msra.mxu1 %v1056_v7 }
  0x18   :  { %967 = vmatprep.subr.bf16.mxu0 %v1057_v8  ;;  %1041 = vmatprep.subr.bf16.mxu1 %v1057_v8 }
  0x1b   :  { %968 = vmatpush3.bf16.msra.mxu0 %v1057_v8  ;;  %1049 = vmatpush3.bf16.msra.mxu1 %v1057_v8 }
  0x1c   :  { %969 = vmatprep.subr.bf16.mxu0 %v1058_v9  ;;  %1042 = vmatprep.subr.bf16.mxu1 %v1058_v9 }
  0x1f   :  { %970 = vmatpush3.bf16.msra.mxu0 %v1058_v9  ;;  %1050 = vmatpush3.bf16.msra.mxu1 %v1058_v9 }
  0x22   :  { %972 = vmatmul.mubr.bf16.vlgmr.msra.gmra.mrb[0].mxu0 %v1060_v10  ;;  %1004 = vmatmul.mubr.bf16.vlgmr.msra.gmra.mrb[0].mxu1 %v1062_v11 }
  0x23   :  { %975 = vmatprep.mubr.bf16.mxu0 %v1063_v12  ;;  %1007 = vmatprep.mubr.bf16.mxu1 %v1065_v13 }
  0x2a   :  { %976 = vmatmul.mubr.bf16.gmra.mrb[4].mxu0 %v1064_v14  ;;  %1008 = vmatmul.mubr.bf16.gmra.mrb[4].mxu1 %v1066_v15 }
  0x2b   :  { %979 = vmatprep.mubr.bf16.mxu0 %v1067_v16  ;;  %1011 = vmatprep.mubr.bf16.mxu1 %v1069_v17 }
  0x32   :  { %980 = vmatmul.mubr.bf16.gmra.mrb[8].mxu0 %v1068_v18  ;;  %1012 = vmatmul.mubr.bf16.gmra.mrb[8].mxu1 %v1070_v19 }
  0x33   :  { %983 = vmatprep.mubr.bf16.mxu0 %v1071_v20  ;;  %1015 = vmatprep.mubr.bf16.mxu1 %v1073_v21  ;;  %v1278_v20 = vld [vmem:[%s1344_s2] ss:$0 sm:$0xff] }
  0x3a   :  { %984 = vmatmul.mubr.bf16.gmra.mrb[12].mxu0 %v1072_v22  ;;  %1016 = vmatmul.mubr.bf16.gmra.mrb[12].mxu1 %v1074_v23 }
  0x3b   :  { %987 = vmatprep.mubr.bf16.mxu0 %v1075_v24  ;;  %1019 = vmatprep.mubr.bf16.mxu1 %v1077_v25 }
  0x42   :  { %988 = vmatmul.mubr.bf16.gmra.mrb[16].mxu0 %v1076_v26  ;;  %1020 = vmatmul.mubr.bf16.gmra.mrb[16].mxu1 %v1078_v27 }
  0x43   :  { %991 = vmatprep.mubr.bf16.mxu0 %v1079_v28  ;;  %1023 = vmatprep.mubr.bf16.mxu1 %v1081_v29 }
  0x4a   :  { %992 = vmatmul.mubr.bf16.gmra.mrb[20].mxu0 %v1080_v30  ;;  %1024 = vmatmul.mubr.bf16.gmra.mrb[20].mxu1 %v1082_v31 }
  0x4b   :  { %995 = vmatprep.mubr.bf16.mxu0 %v1083_v32  ;;  %1027 = vmatprep.mubr.bf16.mxu1 %v1085_v33 }
  0x52   :  { %996 = vmatmul.mubr.bf16.gmra.mrb[24].mxu0 %v1084_v34  ;;  %1028 = vmatmul.mubr.bf16.gmra.mrb[24].mxu1 %v1086_v35 }
  0x53   :  { %999 = vmatprep.mubr.bf16.mxu0 %v1087_v36  ;;  %1031 = vmatprep.mubr.bf16.mxu1 %v1089_v37 }
  0x5a   :  { %1000 = vmatmul.mubr.bf16.gmra.mrb[28].mxu0 %v1088_v38  ;;  %1032 = vmatmul.mubr.bf16.gmra.mrb[28].mxu1 %v1090_v39 }
  0xf5   :  { %v973_v40 = vpop.f32.mrb[0].mxu0  ;;  %v1005_v41 = vpop.f32.mrb[0].mxu1 }
  0xf6   :  { %v369_v42 = vpop.f32.mrb[1].mxu0  ;;  %v497_v43 = vpop.f32.mrb[1].mxu1 }
  0xf7   :  { %v974_v44 = vpop.f32.mrb[2].mxu0  ;;  %v1006_v45 = vpop.f32.mrb[2].mxu1 }
  0xf8   :  { %v372_v46 = vpop.f32.mrb[3].mxu0  ;;  %v500_v47 = vpop.f32.mrb[3].mxu1 }
  0xfd   :  { %v977_v48 = vpop.f32.mrb[4].mxu0  ;;  %v1009_v49 = vpop.f32.mrb[4].mxu1 }
  0xfe   :  { %v1231_v50 = vpop.f32.mrb[5].mxu0  ;;  %v1233_v51 = vpop.f32.mrb[5].mxu1 }
  0xff   :  { %v1235_v52 = vpop.f32.mrb[6].mxu0  ;;  %v1237_v53 = vpop.f32.mrb[6].mxu1 }
 0x100   :  { %v1239_v54 = vpop.f32.mrb[7].mxu0  ;;  %v1241_v55 = vpop.f32.mrb[7].mxu1 }
 0x105   :  { %v1243_v56 = vpop.f32.mrb[8].mxu0  ;;  %v1245_v57 = vpop.f32.mrb[8].mxu1 }
 0x106   :  { %v1247_v58 = vpop.f32.mrb[9].mxu0  ;;  %v1249_v59 = vpop.f32.mrb[9].mxu1 }
 0x107   :  { %v1251_v60 = vpop.f32.mrb[10].mxu0  ;;  %v1253_v61 = vpop.f32.mrb[10].mxu1 }
 0x108   :  { %v1255_v62 = vpop.f32.mrb[11].mxu0  ;;  %v1257_v63 = vpop.f32.mrb[11].mxu1 }
 0x10d   :  { %v1259_v0 = vpop.f32.mrb[12].mxu0  ;;  %v1261_v1 = vpop.f32.mrb[12].mxu1 }
 0x10e   :  { %v1263_v2 = vpop.f32.mrb[13].mxu0  ;;  %v1265_v3 = vpop.f32.mrb[13].mxu1 }
 0x10f   :  { %v1267_v4 = vpop.f32.mrb[14].mxu0  ;;  %v1269_v5 = vpop.f32.mrb[14].mxu1 }
 0x110   :  { %v1271_v6 = vpop.f32.mrb[15].mxu0  ;;  %v1273_v7 = vpop.f32.mrb[15].mxu1 }
 0x115   :  { %v989_v8 = vpop.f32.mrb[16].mxu0  ;;  %v1021_v9 = vpop.f32.mrb[16].mxu1 }
 0x116   :  { %v630_v10 = vmax.f32 %v973_v40, %v989_v8  ;;  %v433_v11 = vpop.f32.mrb[17].mxu0  ;;  %v561_v12 = vpop.f32.mrb[17].mxu1 }
 0x117   :  { %v624_v13 = vmax.f32 %v369_v42, %v433_v11  ;;  %v990_v14 = vpop.f32.mrb[18].mxu0  ;;  %v1022_v15 = vpop.f32.mrb[18].mxu1 }
 0x118   :  { %v631_v16 = vmax.f32 %v630_v10, %v1005_v41  ;;  %v633_v17 = vmax.f32 %v974_v44, %v990_v14  ;;  %v436_v18 = vpop.f32.mrb[19].mxu0  ;;  %v564_v19 = vpop.f32.mrb[19].mxu1 }
 0x119   :  { %v625_v21 = vmax.f32 %v624_v13, %v497_v43  ;;  %v627_v22 = vmax.f32 %v372_v46, %v436_v18 }
 0x11a   :  { %v632_v23 = vmax.f32 %v631_v16, %v1021_v9  ;;  %v634_v24 = vmax.f32 %v633_v17, %v1006_v45 }
 0x11b   :  { %v626_v25 = vmax.f32 %v625_v21, %v561_v12  ;;  %v628_v26 = vmax.f32 %v627_v22, %v500_v47 }
 0x11c   :  { %v681_v27 = vadd.f32 %v1278_v20, %v632_v23  ;;  %v635_v28 = vmax.f32 %v634_v24, %v1022_v15 }
 0x11d   :  { %v679_v29 = vadd.f32 %v1278_v20, %v626_v25  ;;  %v629_v30 = vmax.f32 %v628_v26, %v564_v19  ;;  %v993_v31 = vpop.f32.mrb[20].mxu0  ;;  %v1025_v32 = vpop.f32.mrb[20].mxu1 }
 0x11e   :  { %v682_v33 = vadd.f32 %v1278_v20, %v635_v28  ;;  %v642_v34 = vmax.f32 %v977_v48, %v993_v31  ;;  %v449_v35 = vpop.f32.mrb[21].mxu0  ;;  %v577_v36 = vpop.f32.mrb[21].mxu1  ;;  %v697_v41 = vmax.f32 %v681_v27, 0.0 }
 0x11f   :  { %v680_v37 = vadd.f32 %v1278_v20, %v629_v30  ;;  %v636_v38 = vmax.f32 %v1231_v50, %v449_v35  ;;  %v994_v39 = vpop.f32.mrb[22].mxu0  ;;  %v1026_v40 = vpop.f32.mrb[22].mxu1  ;;  %v695_v47 = vmax.f32 %v679_v29, 0.0 }
 0x120   :  { %v698_v42 = vmax.f32 %v682_v33, 0.0  ;;  %v643_v43 = vmax.f32 %v642_v34, %v1009_v49  ;;  %v645_v44 = vmax.f32 %v1235_v52, %v994_v39  ;;  %v452_v45 = vpop.f32.mrb[23].mxu0  ;;  %v580_v46 = vpop.f32.mrb[23].mxu1 }
 0x121   :  { %v696_v8 = vmax.f32 %v680_v37, 0.0  ;;  %v637_v9 = vmax.f32 %v636_v38, %v1233_v51  ;;  %v639_v48 = vmax.f32 %v1239_v54, %v452_v45 }
 0x122   :  { %v876_v10 = vpack.c.bf16 %v698_v42, %v697_v41  ;;  %v644_v11 = vmax.f32 %v643_v43, %v1025_v32  ;;  %v646_v12 = vmax.f32 %v645_v44, %v1237_v53 }
 0x123   :  { %v871_v50 = vpack.c.bf16 %v696_v8, %v695_v47  ;;  %v638_v13 = vmax.f32 %v637_v9, %v577_v36  ;;  %v640_v14 = vmax.f32 %v639_v48, %v1241_v55 }
 0x124   :  { %908 = vst [vmem:[%s1345_s3 + $0x8] sm:$0xff] %v876_v10   ;;  %v685_v49 = vadd.f32 %v1278_v20, %v644_v11  ;;  %v647_v52 = vmax.f32 %v646_v12, %v1026_v40 }
 0x125   :  { %872 = vst [vmem:[%s1345_s3] sm:$0xff] %v871_v50   ;;  %v683_v51 = vadd.f32 %v1278_v20, %v638_v13  ;;  %v641_v54 = vmax.f32 %v640_v14, %v580_v46  ;;  %v997_v15 = vpop.f32.mrb[24].mxu0  ;;  %v1029_v53 = vpop.f32.mrb[24].mxu1 }
 0x126   :  { %v686_v16 = vadd.f32 %v1278_v20, %v647_v52  ;;  %v654_v55 = vmax.f32 %v1243_v56, %v997_v15  ;;  %v465_v17 = vpop.f32.mrb[25].mxu0  ;;  %v593_v18 = vpop.f32.mrb[25].mxu1  ;;  %v701_v24 = vmax.f32 %v685_v49, 0.0 }
 0x127   :  { %v684_v19 = vadd.f32 %v1278_v20, %v641_v54  ;;  %v648_v21 = vmax.f32 %v1247_v58, %v465_v17  ;;  %v998_v22 = vpop.f32.mrb[26].mxu0  ;;  %v1030_v23 = vpop.f32.mrb[26].mxu1  ;;  %v699_v30 = vmax.f32 %v683_v51, 0.0 }
 0x128   :  { %v702_v25 = vmax.f32 %v686_v16, 0.0  ;;  %v655_v26 = vmax.f32 %v654_v55, %v1245_v57  ;;  %v657_v27 = vmax.f32 %v1251_v60, %v998_v22  ;;  %v468_v28 = vpop.f32.mrb[27].mxu0  ;;  %v596_v29 = vpop.f32.mrb[27].mxu1 }
 0x129   :  { %v700_v31 = vmax.f32 %v684_v19, 0.0  ;;  %v649_v56 = vmax.f32 %v648_v21, %v1249_v59  ;;  %v651_v32 = vmax.f32 %v1255_v62, %v468_v28 }
 0x12a   :  { %v886_v33 = vpack.c.bf16 %v702_v25, %v701_v24  ;;  %v656_v34 = vmax.f32 %v655_v26, %v1029_v53  ;;  %v658_v58 = vmax.f32 %v657_v27, %v1253_v61 }
 0x12b   :  { %v881_v35 = vpack.c.bf16 %v700_v31, %v699_v30  ;;  %v650_v36 = vmax.f32 %v649_v56, %v593_v18  ;;  %v652_v37 = vmax.f32 %v651_v32, %v1257_v63 }
 0x12c   :  { %910 = vst [vmem:[%s1345_s3 + $0x18] sm:$0xff] %v886_v33   ;;  %v689_v57 = vadd.f32 %v1278_v20, %v656_v34  ;;  %v659_v60 = vmax.f32 %v658_v58, %v1030_v23 }
 0x12d   :  { %909 = vst [vmem:[%s1345_s3 + $0x10] sm:$0xff] %v881_v35   ;;  %v687_v59 = vadd.f32 %v1278_v20, %v650_v36  ;;  %v653_v62 = vmax.f32 %v652_v37, %v596_v29  ;;  %v1001_v38 = vpop.f32.mrb[28].mxu0  ;;  %v1033_v61 = vpop.f32.mrb[28].mxu1 }
 0x12e   :  { %v690_v39 = vadd.f32 %v1278_v20, %v659_v60  ;;  %v666_v63 = vmax.f32 %v1259_v0, %v1001_v38  ;;  %v481_v40 = vpop.f32.mrb[29].mxu0  ;;  %v609_v41 = vpop.f32.mrb[29].mxu1  ;;  %v705_v46 = vmax.f32 %v689_v57, 0.0 }
 0x12f   :  { %v688_v42 = vadd.f32 %v1278_v20, %v653_v62  ;;  %v660_v43 = vmax.f32 %v1263_v2, %v481_v40  ;;  %v1002_v44 = vpop.f32.mrb[30].mxu0  ;;  %v1034_v45 = vpop.f32.mrb[30].mxu1  ;;  %v703_v11 = vmax.f32 %v687_v59, 0.0 }
 0x130   :  { %v706_v47 = vmax.f32 %v690_v39, 0.0  ;;  %v667_v8 = vmax.f32 %v666_v63, %v1261_v1  ;;  %v669_v9 = vmax.f32 %v1267_v4, %v1002_v44  ;;  %v484_v48 = vpop.f32.mrb[31].mxu0  ;;  %v612_v10 = vpop.f32.mrb[31].mxu1 }
 0x131   :  { %v704_v12 = vmax.f32 %v688_v42, 0.0  ;;  %v661_v0 = vmax.f32 %v660_v43, %v1265_v3  ;;  %v663_v50 = vmax.f32 %v1271_v6, %v484_v48 }
 0x132   :  { %v896_v13 = vpack.c.bf16 %v706_v47, %v705_v46  ;;  %v668_v14 = vmax.f32 %v667_v8, %v1033_v61  ;;  %v670_v2 = vmax.f32 %v669_v9, %v1269_v5 }
 0x133   :  { %v891_v49 = vpack.c.bf16 %v704_v12, %v703_v11  ;;  %v662_v52 = vmax.f32 %v661_v0, %v609_v41  ;;  %v664_v51 = vmax.f32 %v663_v50, %v1273_v7 }
 0x134   :  { %912 = vst [vmem:[%s1345_s3 + $0x28] sm:$0xff] %v896_v13   ;;  %v693_v1 = vadd.f32 %v1278_v20, %v668_v14  ;;  %v671_v4 = vmax.f32 %v670_v2, %v1034_v45 }
 0x135   :  { %911 = vst [vmem:[%s1345_s3 + $0x20] sm:$0xff] %v891_v49   ;;  %v691_v3 = vadd.f32 %v1278_v20, %v662_v52  ;;  %v665_v6 = vmax.f32 %v664_v51, %v612_v10 }
 0x136   :  { %v694_v5 = vadd.f32 %v1278_v20, %v671_v4  ;;  %v709_v15 = vmax.f32 %v693_v1, 0.0 }
 0x137   :  { %v692_v54 = vadd.f32 %v1278_v20, %v665_v6  ;;  %v707_v53 = vmax.f32 %v691_v3, 0.0 }
 0x138   :  { %v710_v7 = vmax.f32 %v694_v5, 0.0 }
 0x139   :  { %v708_v16 = vmax.f32 %v692_v54, 0.0 }
 0x13a   :  { %v906_v55 = vpack.c.bf16 %v710_v7, %v709_v15 }
 0x13b   :  { %v901_v17 = vpack.c.bf16 %v708_v16, %v707_v53 }
 0x13c   :  { %914 = vst [vmem:[%s1345_s3 + $0x38] sm:$0xff] %v906_v55  }
 0x13d   :  { %913 = vst [vmem:[%s1345_s3 + $0x30] sm:$0xff] %v901_v17  }

// kernel: stego_net_forward.4
= control target key start
LH: loop header
LB: loop body
LE: loop exit
PB: predicated region body
PF: predicated region fallthrough
CT: control target
= control target key end

     0   :  { %v912_v0 = vmov 0   ;;  %vm415_vm0 = vcmask 392192   ;;  %s1138_s1 = inlined_call_operand.vmem [shape: bf16[432,128], index: 1, kind: input, shape index: {}]   ;;  %s1139_s0 = inlined_call_operand.vmem [shape: bf16[4,32,432], index: 0, kind: input, shape index: {}]   ;;  %s1140_s2 = inlined_call_operand.vmem [shape: f32[1,128], index: 2, kind: input, shape index: {}]   ;;  %s1141_s3 = inlined_call_operand.vmem [shape: bf16[32,128], index: 3, kind: output, shape index: {}]  }
   0x1   :  { %537 = vmatprep.subr.bf16.mxu1 %v912_v0  ;;  %v837_v1 = vld [vmem:[%s1138_s1 + $0x80] sm:$0xff]   ;;  %v838_v2 = vld [vmem:[%s1138_s1 + $0x88] sm:$0xff]   ;;  %v841_v5 = vld [vmem:[%s1138_s1 + $0x90] sm:$0xff]  }
   0x2   :  { %538 = vmatpush1.bf16.msra.mxu1 %v837_v1  ;;  %v839_v3 = vld [vmem:[%s1138_s1 + $0x40] sm:$0xff]   ;;  %v842_v6 = vld [vmem:[%s1138_s1 + $0x48] sm:$0xff]   ;;  %v845_v8 = vld [vmem:[%s1138_s1 + $0x50] sm:$0xff]  }
   0x3   :  { %539 = vmatprep.subr.bf16.mxu1 %v912_v0  ;;  %v840_v4 = vld [vmem:[%s1138_s1] sm:$0xff]   ;;  %772 = vmatprep.subr.bf16.mxu0 %v839_v3  ;;  %v843_v7 = vld [vmem:[%s1138_s1 + $0x8] sm:$0xff]   ;;  %v846_v9 = vld [vmem:[%s1138_s1 + $0x10] sm:$0xff]  }
   0x4   :  { %773 = vmatpush3.bf16.msra.mxu0 %v840_v4  ;;  %v844_v10 = vld [vmem:[%s1138_s1 + $0x98] sm:$0xff]   ;;  %v847_v12 = vld [vmem:[%s1138_s1 + $0xa0] sm:$0xff]   ;;  %v850_v15 = vld [vmem:[%s1138_s1 + $0xa8] sm:$0xff]  }
   0x5   :  { %774 = vmatprep.subr.bf16.mxu0 %v842_v6  ;;  %v848_v11 = vld [vmem:[%s1138_s1 + $0x58] sm:$0xff]   ;;  %v851_v14 = vld [vmem:[%s1138_s1 + $0x60] sm:$0xff]   ;;  %v854_v17 = vld [vmem:[%s1138_s1 + $0x68] sm:$0xff]  }
   0x6   :  { %540 = vmatpush1.bf16.msra.mxu1 %v838_v2  ;;  %v849_v13 = vld [vmem:[%s1138_s1 + $0x18] sm:$0xff]   ;;  %v852_v16 = vld [vmem:[%s1138_s1 + $0x20] sm:$0xff]   ;;  %v853_v18 = vld [vmem:[%s1138_s1 + $0xb0] sm:$0xff]  }
   0x7   :  { %541 = vmatprep.subr.bf16.mxu1 %v912_v0  ;;  %v855_v19 = vld [vmem:[%s1138_s1 + $0x28] sm:$0xff]   ;;  %v857_v20 = vld [vmem:[%s1138_s1 + $0x70] sm:$0xff]   ;;  %v856_v21 = vld [vmem:[%s1138_s1 + $0xb8] sm:$0xff]  }
   0x8   :  { %775 = vmatpush3.bf16.msra.mxu0 %v843_v7  ;;  %v858_v22 = vld [vmem:[%s1138_s1 + $0x30] sm:$0xff]   ;;  %v860_v23 = vld [vmem:[%s1138_s1 + $0x78] sm:$0xff]   ;;  %v859_v27 = vld [vmem:[%s1138_s1 + $0xc0] sm:$0xff]  }
   0x9   :  { %776 = vmatprep.subr.bf16.mxu0 %v845_v8  ;;  %v864_v24 = vld [vmem:[%s1139_s0 + $0x4] ss:$16 sps:$4 sm:$0xff]   ;;  %v861_v25 = vld [vmem:[%s1138_s1 + $0x38] sm:$0xff]   ;;  %v862_v28 = vld [vmem:[%s1139_s0] ss:$16 sps:$4 sm:$0xff]  }
   0xa   :  { %542 = vmatpush1.bf16.msra.mxu1 %v841_v5  ;;  %472 = vmatprep.mubr.bf16.mxu0 %v864_v24  ;;  %v869_v26 = vld [vmem:[%s1139_s0 + $0xc] ss:$16 sps:$4 sm:$0xff]   ;;  %v870_v29 = vld [vmem:[%s1139_s0 + $0x24] ss:$16 sps:$4 sm:$0xff]   ;;  %v872_v32 = vld [vmem:[%s1139_s0 + $0x20] ss:$16 sps:$4 sm:$0xff]  }
   0xb   :  { %543 = vmatprep.subr.bf16.mxu1 %v912_v0  ;;  %744 = vmatprep.mubr.msk.bf16.mxu1 %vm415_vm0, %v869_v26  ;;  %v865_v30 = vld [vmem:[%s1138_s1 + $0xc8] sm:$0xff]   ;;  %v866_v31 = vld [vmem:[%s1138_s1 + $0xd0] sm:$0xff]  }
   0xc   :  { %777 = vmatpush3.bf16.msra.mxu0 %v846_v9  ;;  %v867_v33 = vld [vmem:[%s1139_s0 + $0x8] ss:$16 sps:$4 sm:$0xff]   ;;  %v876_v34 = vld [vmem:[%s1139_s0 + $0x44] ss:$16 sps:$4 sm:$0xff]   ;;  %v873_v35 = vld [vmem:[%s1139_s0 + $0x2c] ss:$16 sps:$4 sm:$0xff]  }
   0xd   :  { %778 = vmatprep.subr.bf16.mxu0 %v848_v11  ;;  %v878_v36 = vld [vmem:[%s1139_s0 + $0x40] ss:$16 sps:$4 sm:$0xff]   ;;  %v875_v37 = vld [vmem:[%s1139_s0 + $0x28] ss:$16 sps:$4 sm:$0xff]   ;;  %v882_v38 = vld [vmem:[%s1139_s0 + $0x64] ss:$16 sps:$4 sm:$0xff]  }
   0xe   :  { %544 = vmatpush1.bf16.msra.mxu1 %v844_v10  ;;  %v879_v39 = vld [vmem:[%s1139_s0 + $0x4c] ss:$16 sps:$4 sm:$0xff]   ;;  %v884_v40 = vld [vmem:[%s1139_s0 + $0x60] ss:$16 sps:$4 sm:$0xff]   ;;  %v881_v41 = vld [vmem:[%s1139_s0 + $0x48] ss:$16 sps:$4 sm:$0xff]  }
   0xf   :  { %545 = vmatprep.subr.bf16.mxu1 %v912_v0  ;;  %v888_v42 = vld [vmem:[%s1139_s0 + $0x84] ss:$16 sps:$4 sm:$0xff]   ;;  %v885_v43 = vld [vmem:[%s1139_s0 + $0x6c] ss:$16 sps:$4 sm:$0xff]   ;;  %v890_v44 = vld [vmem:[%s1139_s0 + $0x80] ss:$16 sps:$4 sm:$0xff]  }
  0x10   :  { %779 = vmatpush3.bf16.msra.mxu0 %v849_v13  ;;  %v887_v45 = vld [vmem:[%s1139_s0 + $0x68] ss:$16 sps:$4 sm:$0xff]   ;;  %v894_v46 = vld [vmem:[%s1139_s0 + $0xa4] ss:$16 sps:$4 sm:$0xff]   ;;  %v891_v47 = vld [vmem:[%s1139_s0 + $0x8c] ss:$16 sps:$4 sm:$0xff]  }
  0x11   :  { %780 = vmatprep.subr.bf16.mxu0 %v851_v14  ;;  %v896_v48 = vld [vmem:[%s1139_s0 + $0xa0] ss:$16 sps:$4 sm:$0xff]   ;;  %v893_v49 = vld [vmem:[%s1139_s0 + $0x88] ss:$16 sps:$4 sm:$0xff]   ;;  %v900_v50 = vld [vmem:[%s1139_s0 + $0xc4] ss:$16 sps:$4 sm:$0xff]  }
  0x12   :  { %546 = vmatpush1.bf16.msra.mxu1 %v847_v12  ;;  %v897_v51 = vld [vmem:[%s1139_s0 + $0xac] ss:$16 sps:$4 sm:$0xff]   ;;  %v902_v52 = vld [vmem:[%s1139_s0 + $0xc0] ss:$16 sps:$4 sm:$0xff]   ;;  %v899_v53 = vld [vmem:[%s1139_s0 + $0xa8] ss:$16 sps:$4 sm:$0xff]  }
  0x13   :  { %547 = vmatprep.subr.bf16.mxu1 %v912_v0  ;;  %v906_v54 = vld [vmem:[%s1139_s0 + $0xe4] ss:$16 sps:$4 sm:$0xff]   ;;  %v903_v55 = vld [vmem:[%s1139_s0 + $0xcc] ss:$16 sps:$4 sm:$0xff]   ;;  %v908_v56 = vld [vmem:[%s1139_s0 + $0xe0] ss:$16 sps:$4 sm:$0xff]  }
  0x14   :  { %781 = vmatpush3.bf16.msra.mxu0 %v852_v16  ;;  %v905_v57 = vld [vmem:[%s1139_s0 + $0xc8] ss:$16 sps:$4 sm:$0xff]   ;;  %v909_v58 = vld [vmem:[%s1139_s0 + $0xec] ss:$16 sps:$4 sm:$0xff]  }
  0x15   :  { %782 = vmatprep.subr.bf16.mxu0 %v854_v17  ;;  %v911_v59 = vld [vmem:[%s1139_s0 + $0xe8] ss:$16 sps:$4 sm:$0xff]  }
  0x16   :  { %548 = vmatpush1.bf16.msra.mxu1 %v850_v15 }
  0x17   :  { %549 = vmatprep.subr.bf16.mxu1 %v912_v0 }
  0x18   :  { %783 = vmatpush3.bf16.msra.mxu0 %v855_v19 }
  0x19   :  { %784 = vmatprep.subr.bf16.mxu0 %v857_v20 }
  0x1a   :  { %550 = vmatpush1.bf16.msra.mxu1 %v853_v18 }
  0x1b   :  { %551 = vmatprep.subr.bf16.mxu1 %v912_v0 }
  0x1c   :  { %785 = vmatpush3.bf16.msra.mxu0 %v858_v22 }
  0x1d   :  { %786 = vmatprep.subr.bf16.mxu0 %v860_v23 }
  0x1e   :  { %552 = vmatpush1.bf16.msra.mxu1 %v856_v21 }
  0x1f   :  { %553 = vmatprep.subr.bf16.mxu1 %v912_v0 }
  0x20   :  { %787 = vmatpush3.bf16.msra.mxu0 %v861_v25 }
  0x22   :  { %554 = vmatpush1.bf16.msra.mxu1 %v859_v27 }
  0x23   :  { %555 = vmatprep.subr.bf16.mxu1 %v912_v0  ;;  %473 = vmatmul.mubr.bf16.vlgmr.msra.gmra.mrb[0].mxu0 %v862_v28 }
  0x24   :  { %480 = vmatprep.mubr.bf16.mxu0 %v870_v29 }
  0x26   :  { %556 = vmatpush1.bf16.msra.mxu1 %v865_v30 }
  0x27   :  { %557 = vmatprep.subr.bf16.mxu1 %v912_v0 }
  0x2a   :  { %558 = vmatpush1.bf16.msra.mxu1 %v866_v31 }
  0x2b   :  { %481 = vmatmul.mubr.bf16.gmra.mrb[4].mxu0 %v872_v32 }
  0x2c   :  { %488 = vmatprep.mubr.bf16.mxu0 %v876_v34 }
  0x2d   :  { %570 = vmatmul.mubr.bf16.vlgmr.msra.gmra.mrb[0].mxu1 %v867_v33 }
  0x2e   :  { %745 = vmatprep.mubr.msk.bf16.mxu1 %vm415_vm0, %v873_v35 }
  0x33   :  { %489 = vmatmul.mubr.bf16.gmra.mrb[8].mxu0 %v878_v36 }
  0x34   :  { %496 = vmatprep.mubr.bf16.mxu0 %v882_v38 }
  0x35   :  { %578 = vmatmul.mubr.bf16.gmra.mrb[4].mxu1 %v875_v37 }
  0x36   :  { %746 = vmatprep.mubr.msk.bf16.mxu1 %vm415_vm0, %v879_v39 }
  0x3b   :  { %497 = vmatmul.mubr.bf16.gmra.mrb[12].mxu0 %v884_v40 }
  0x3c   :  { %504 = vmatprep.mubr.bf16.mxu0 %v888_v42 }
  0x3d   :  { %586 = vmatmul.mubr.bf16.gmra.mrb[8].mxu1 %v881_v41 }
  0x3e   :  { %747 = vmatprep.mubr.msk.bf16.mxu1 %vm415_vm0, %v885_v43 }
  0x43   :  { %505 = vmatmul.mubr.bf16.gmra.mrb[16].mxu0 %v890_v44 }
  0x44   :  { %512 = vmatprep.mubr.bf16.mxu0 %v894_v46 }
  0x45   :  { %594 = vmatmul.mubr.bf16.gmra.mrb[12].mxu1 %v887_v45 }
  0x46   :  { %748 = vmatprep.mubr.msk.bf16.mxu1 %vm415_vm0, %v891_v47 }
  0x4b   :  { %513 = vmatmul.mubr.bf16.gmra.mrb[20].mxu0 %v896_v48 }
  0x4c   :  { %520 = vmatprep.mubr.bf16.mxu0 %v900_v50 }
  0x4d   :  { %602 = vmatmul.mubr.bf16.gmra.mrb[16].mxu1 %v893_v49 }
  0x4e   :  { %749 = vmatprep.mubr.msk.bf16.mxu1 %vm415_vm0, %v897_v51 }
  0x53   :  { %521 = vmatmul.mubr.bf16.gmra.mrb[24].mxu0 %v902_v52 }
  0x54   :  { %528 = vmatprep.mubr.bf16.mxu0 %v906_v54 }
  0x55   :  { %610 = vmatmul.mubr.bf16.gmra.mrb[20].mxu1 %v899_v53 }
  0x56   :  { %750 = vmatprep.mubr.msk.bf16.mxu1 %vm415_vm0, %v903_v55 }
  0x5b   :  { %529 = vmatmul.mubr.bf16.gmra.mrb[28].mxu0 %v908_v56 }
  0x5d   :  { %618 = vmatmul.mubr.bf16.gmra.mrb[24].mxu1 %v905_v57 }
  0x5e   :  { %751 = vmatprep.mubr.msk.bf16.mxu1 %vm415_vm0, %v909_v58 }
  0x65   :  { %626 = vmatmul.mubr.bf16.gmra.mrb[28].mxu1 %v911_v59 }
  0xf6   :  { %v788_v60 = vpop.f32.mrb[0].mxu0 }
  0xf7   :  { %v789_v61 = vpop.f32.mrb[1].mxu0 }
  0xf8   :  { %v790_v62 = vadd.f32 %v789_v61, %v788_v60  ;;  %v791_v63 = vpop.f32.mrb[2].mxu0 }
  0xf9   :  { %v792_v0 = vpop.f32.mrb[3].mxu0 }
  0xfa   :  { %v793_v1 = vadd.f32 %v792_v0, %v791_v63 }
  0xfe   :  { %v794_v2 = vpop.f32.mrb[4].mxu0 }
  0xff   :  { %v795_v4 = vpop.f32.mrb[5].mxu0 }
 0x100   :  { %v571_v3 = vpop.f32.mrb[0].mxu1  ;;  %v796_v7 = vadd.f32 %v795_v4, %v794_v2  ;;  %v797_v8 = vpop.f32.mrb[6].mxu0 }
 0x101   :  { %v572_v5 = vadd.f32 %v790_v62, %v571_v3  ;;  %v573_v6 = vpop.f32.mrb[1].mxu1  ;;  %v798_v10 = vpop.f32.mrb[7].mxu0 }
 0x102   :  { %v574_v9 = vpop.f32.mrb[2].mxu1  ;;  %v799_v13 = vadd.f32 %v798_v10, %v797_v8 }
 0x103   :  { %v575_v11 = vadd.f32 %v793_v1, %v574_v9  ;;  %v576_v12 = vpop.f32.mrb[3].mxu1 }
 0x106   :  { %v800_v14 = vpop.f32.mrb[8].mxu0 }
 0x107   :  { %v801_v16 = vpop.f32.mrb[9].mxu0 }
 0x108   :  { %v579_v15 = vpop.f32.mrb[4].mxu1  ;;  %v802_v19 = vadd.f32 %v801_v16, %v800_v14  ;;  %v803_v20 = vpop.f32.mrb[10].mxu0 }
 0x109   :  { %v580_v17 = vadd.f32 %v796_v7, %v579_v15  ;;  %v581_v18 = vpop.f32.mrb[5].mxu1  ;;  %v804_v22 = vpop.f32.mrb[11].mxu0 }
 0x10a   :  { %v582_v21 = vpop.f32.mrb[6].mxu1  ;;  %v805_v25 = vadd.f32 %v804_v22, %v803_v20 }
 0x10b   :  { %v583_v23 = vadd.f32 %v799_v13, %v582_v21  ;;  %v584_v24 = vpop.f32.mrb[7].mxu1 }
 0x10e   :  { %v806_v26 = vpop.f32.mrb[12].mxu0 }
 0x10f   :  { %v807_v28 = vpop.f32.mrb[13].mxu0 }
 0x110   :  { %v587_v27 = vpop.f32.mrb[8].mxu1  ;;  %v808_v31 = vadd.f32 %v807_v28, %v806_v26  ;;  %v809_v32 = vpop.f32.mrb[14].mxu0 }
 0x111   :  { %v588_v29 = vadd.f32 %v802_v19, %v587_v27  ;;  %v589_v30 = vpop.f32.mrb[9].mxu1  ;;  %v810_v34 = vpop.f32.mrb[15].mxu0 }
 0x112   :  { %v590_v33 = vpop.f32.mrb[10].mxu1  ;;  %v811_v38 = vadd.f32 %v810_v34, %v809_v32 }
 0x113   :  { %v634_v35 = vmax.f32 %v572_v5, %v588_v29  ;;  %v591_v36 = vadd.f32 %v805_v25, %v590_v33  ;;  %v592_v37 = vpop.f32.mrb[11].mxu1  ;;  %v752_v25 = vld [vmem:[%s1140_s2] ss:$0 sm:$0xff] }
 0x115   :  { %v637_v39 = vmax.f32 %v575_v11, %v591_v36 }
 0x116   :  { %v812_v40 = vpop.f32.mrb[16].mxu0 }
 0x117   :  { %v813_v42 = vpop.f32.mrb[17].mxu0 }
 0x118   :  { %v595_v41 = vpop.f32.mrb[12].mxu1  ;;  %v814_v45 = vadd.f32 %v813_v42, %v812_v40  ;;  %v815_v46 = vpop.f32.mrb[18].mxu0 }
 0x119   :  { %v596_v43 = vadd.f32 %v808_v31, %v595_v41  ;;  %v597_v44 = vpop.f32.mrb[13].mxu1  ;;  %v816_v48 = vpop.f32.mrb[19].mxu0 }
 0x11a   :  { %v598_v47 = vpop.f32.mrb[14].mxu1  ;;  %v817_v52 = vadd.f32 %v816_v48, %v815_v46 }
 0x11b   :  { %v640_v49 = vmax.f32 %v580_v17, %v596_v43  ;;  %v599_v50 = vadd.f32 %v811_v38, %v598_v47  ;;  %v600_v51 = vpop.f32.mrb[15].mxu1 }
 0x11d   :  { %v643_v53 = vmax.f32 %v583_v23, %v599_v50 }
 0x11e   :  { %v818_v54 = vpop.f32.mrb[20].mxu0 }
 0x11f   :  { %v819_v56 = vpop.f32.mrb[21].mxu0 }
 0x120   :  { %v603_v55 = vpop.f32.mrb[16].mxu1  ;;  %v820_v59 = vadd.f32 %v819_v56, %v818_v54  ;;  %v821_v60 = vpop.f32.mrb[22].mxu0 }
 0x121   :  { %v604_v57 = vadd.f32 %v814_v45, %v603_v55  ;;  %v605_v58 = vpop.f32.mrb[17].mxu1  ;;  %v822_v62 = vpop.f32.mrb[23].mxu0 }
 0x122   :  { %v606_v61 = vpop.f32.mrb[18].mxu1  ;;  %v823_v2 = vadd.f32 %v822_v62, %v821_v60 }
 0x123   :  { %v635_v63 = vmax.f32 %v634_v35, %v604_v57  ;;  %v607_v0 = vadd.f32 %v817_v52, %v606_v61  ;;  %v608_v1 = vpop.f32.mrb[19].mxu1 }
 0x125   :  { %v638_v3 = vmax.f32 %v637_v39, %v607_v0 }
 0x126   :  { %v824_v4 = vpop.f32.mrb[24].mxu0 }
 0x127   :  { %v825_v6 = vpop.f32.mrb[25].mxu0 }
 0x128   :  { %v611_v5 = vpop.f32.mrb[20].mxu1  ;;  %v826_v9 = vadd.f32 %v825_v6, %v824_v4  ;;  %v827_v10 = vpop.f32.mrb[26].mxu0 }
 0x129   :  { %v612_v7 = vadd.f32 %v820_v59, %v611_v5  ;;  %v613_v8 = vpop.f32.mrb[21].mxu1  ;;  %v828_v12 = vpop.f32.mrb[27].mxu0 }
 0x12a   :  { %v614_v11 = vpop.f32.mrb[22].mxu1  ;;  %v829_v16 = vadd.f32 %v828_v12, %v827_v10 }
 0x12b   :  { %v641_v13 = vmax.f32 %v640_v49, %v612_v7  ;;  %v615_v14 = vadd.f32 %v823_v2, %v614_v11  ;;  %v616_v15 = vpop.f32.mrb[23].mxu1 }
 0x12d   :  { %v644_v17 = vmax.f32 %v643_v53, %v615_v14 }
 0x12e   :  { %v830_v18 = vpop.f32.mrb[28].mxu0 }
 0x12f   :  { %v831_v20 = vpop.f32.mrb[29].mxu0 }
 0x130   :  { %v619_v19 = vpop.f32.mrb[24].mxu1  ;;  %v832_v23 = vadd.f32 %v831_v20, %v830_v18  ;;  %v833_v24 = vpop.f32.mrb[30].mxu0 }
 0x131   :  { %v620_v21 = vadd.f32 %v826_v9, %v619_v19  ;;  %v621_v22 = vpop.f32.mrb[25].mxu1  ;;  %v834_v27 = vpop.f32.mrb[31].mxu0 }
 0x132   :  { %v622_v26 = vpop.f32.mrb[26].mxu1  ;;  %v835_v31 = vadd.f32 %v834_v27, %v833_v24 }
 0x133   :  { %v636_v28 = vmax.f32 %v635_v63, %v620_v21  ;;  %v623_v29 = vadd.f32 %v829_v16, %v622_v26  ;;  %v624_v30 = vpop.f32.mrb[27].mxu1 }
 0x135   :  { %v653_v32 = vadd.f32 %v752_v25, %v636_v28  ;;  %v639_v33 = vmax.f32 %v638_v3, %v623_v29 }
 0x137   :  { %v654_v34 = vadd.f32 %v752_v25, %v639_v33  ;;  %v657_v36 = vmax.f32 %v653_v32, 0.0 }
 0x138   :  { %v627_v35 = vpop.f32.mrb[28].mxu1 }
 0x139   :  { %v658_v37 = vmax.f32 %v654_v34, 0.0  ;;  %v628_v38 = vadd.f32 %v832_v23, %v627_v35  ;;  %v629_v39 = vpop.f32.mrb[29].mxu1 }
 0x13a   :  { %v630_v40 = vpop.f32.mrb[30].mxu1 }
 0x13b   :  { %v764_v41 = vpack.c.bf16 %v658_v37, %v657_v36  ;;  %v642_v42 = vmax.f32 %v641_v13, %v628_v38  ;;  %v631_v43 = vadd.f32 %v835_v31, %v630_v40  ;;  %v632_v44 = vpop.f32.mrb[31].mxu1 }
 0x13d   :  { %765 = vst [vmem:[%s1141_s3] sm:$0xff] %v764_v41   ;;  %v655_v45 = vadd.f32 %v752_v25, %v642_v42  ;;  %v645_v46 = vmax.f32 %v644_v17, %v631_v43 }
 0x13f   :  { %v656_v47 = vadd.f32 %v752_v25, %v645_v46  ;;  %v659_v48 = vmax.f32 %v655_v45, 0.0 }
 0x141   :  { %v660_v49 = vmax.f32 %v656_v47, 0.0 }
 0x143   :  { %v769_v50 = vpack.c.bf16 %v660_v49, %v659_v48 }
 0x145   :  { %771 = vst [vmem:[%s1141_s3 + $0x8] sm:$0xff] %v769_v50  }

// kernel: stego_net_forward.5
= control target key start
LH: loop header
LB: loop body
LE: loop exit
PB: predicated region body
PF: predicated region fallthrough
CT: control target
= control target key end

     0   :  { %v934_v1 = vmov 0   ;;  %vm293_vm0 = vcmask 392192   ;;  %s1196_s0 = inlined_call_operand.vmem [shape: bf16[4,8,432], index: 0, kind: input, shape index: {}]   ;;  %s1197_s1 = inlined_call_operand.vmem [shape: bf16[432,128], index: 1, kind: input, shape index: {}]   ;;  %s1198_s2 = inlined_call_operand.vmem [shape: f32[1,128], index: 2, kind: input, shape index: {}]   ;;  %s1199_s3 = inlined_call_operand.vmem [shape: bf16[2,8], index: 3, kind: input, shape index: {}]   ;;  %s1200_s4 = inlined_call_operand.vmem [shape: bf16[128,128], index: 4, kind: input, shape index: {}]   ;;  %s1201_s5 = inlined_call_operand.vmem [shape: f32[1,128], index: 5, kind: input, shape index: {}]   ;;  %s1202_s6 = inlined_call_operand.vmem [shape: bf16[128,128], index: 6, kind: input, shape index: {}]   ;;  %s1203_s7 = inlined_call_operand.vmem [shape: f32[1,128], index: 7, kind: input, shape index: {}]   ;;  %s1204_s8 = inlined_call_operand.hbm [shape: f32[2,128], index: 8, kind: output, shape index: {}]  }
   0x1   :  { %v855_v0 = vld [vmem:[%s1197_s1 + $0x80] sm:$0xff]   ;;  %349 = vmatprep.subr.bf16.mxu1 %v934_v1  ;;  %v856_v2 = vld [vmem:[%s1197_s1 + $0x88] sm:$0xff]   ;;  %v859_v5 = vld [vmem:[%s1197_s1 + $0x90] sm:$0xff]  }
   0x2   :  { %350 = vmatpush1.bf16.msra.mxu1 %v855_v0  ;;  %v857_v3 = vld [vmem:[%s1197_s1 + $0x40] sm:$0xff]   ;;  %v860_v6 = vld [vmem:[%s1197_s1 + $0x48] sm:$0xff]   ;;  %v863_v8 = vld [vmem:[%s1197_s1 + $0x50] sm:$0xff]  }
   0x3   :  { %351 = vmatprep.subr.bf16.mxu1 %v934_v1  ;;  %v858_v4 = vld [vmem:[%s1197_s1] sm:$0xff]   ;;  %757 = vmatprep.subr.bf16.mxu0 %v857_v3  ;;  %v861_v7 = vld [vmem:[%s1197_s1 + $0x8] sm:$0xff]   ;;  %v864_v9 = vld [vmem:[%s1197_s1 + $0x10] sm:$0xff]  }
   0x4   :  { %758 = vmatpush3.bf16.msra.mxu0 %v858_v4  ;;  %v862_v10 = vld [vmem:[%s1197_s1 + $0x98] sm:$0xff]   ;;  %v865_v12 = vld [vmem:[%s1197_s1 + $0xa0] sm:$0xff]   ;;  %v868_v15 = vld [vmem:[%s1197_s1 + $0xa8] sm:$0xff]  }
   0x5   :  { %759 = vmatprep.subr.bf16.mxu0 %v860_v6  ;;  %v866_v11 = vld [vmem:[%s1197_s1 + $0x58] sm:$0xff]   ;;  %v869_v14 = vld [vmem:[%s1197_s1 + $0x60] sm:$0xff]   ;;  %v872_v17 = vld [vmem:[%s1197_s1 + $0x68] sm:$0xff]  }
   0x6   :  { %352 = vmatpush1.bf16.msra.mxu1 %v856_v2  ;;  %v867_v13 = vld [vmem:[%s1197_s1 + $0x18] sm:$0xff]   ;;  %v870_v16 = vld [vmem:[%s1197_s1 + $0x20] sm:$0xff]   ;;  %v871_v18 = vld [vmem:[%s1197_s1 + $0xb0] sm:$0xff]  }
   0x7   :  { %353 = vmatprep.subr.bf16.mxu1 %v934_v1  ;;  %v873_v19 = vld [vmem:[%s1197_s1 + $0x28] sm:$0xff]   ;;  %v875_v20 = vld [vmem:[%s1197_s1 + $0x70] sm:$0xff]   ;;  %v874_v21 = vld [vmem:[%s1197_s1 + $0xb8] sm:$0xff]  }
   0x8   :  { %760 = vmatpush3.bf16.msra.mxu0 %v861_v7  ;;  %v876_v22 = vld [vmem:[%s1197_s1 + $0x30] sm:$0xff]   ;;  %v878_v23 = vld [vmem:[%s1197_s1 + $0x78] sm:$0xff]   ;;  %v877_v27 = vld [vmem:[%s1197_s1 + $0xc0] sm:$0xff]  }
   0x9   :  { %761 = vmatprep.subr.bf16.mxu0 %v863_v8  ;;  %v882_v24 = vld [vmem:[%s1196_s0 + $0x4] ss:$16 sps:$4 sm:$0xff]   ;;  %v879_v25 = vld [vmem:[%s1197_s1 + $0x38] sm:$0xff]   ;;  %v880_v28 = vld [vmem:[%s1196_s0] ss:$16 sps:$4 sm:$0xff]  }
   0xa   :  { %354 = vmatpush1.bf16.msra.mxu1 %v859_v5  ;;  %332 = vmatprep.mubr.bf16.mxu0 %v882_v24  ;;  %v887_v26 = vld [vmem:[%s1196_s0 + $0xc] ss:$16 sps:$4 sm:$0xff]   ;;  %v888_v30 = vld [vmem:[%s1196_s0 + $0x24] ss:$16 sps:$4 sm:$0xff]   ;;  %v890_v32 = vld [vmem:[%s1196_s0 + $0x20] ss:$16 sps:$4 sm:$0xff]  }
   0xb   :  { %355 = vmatprep.subr.bf16.mxu1 %v934_v1  ;;  %735 = vmatprep.mubr.msk.bf16.mxu1 %vm293_vm0, %v887_v26  ;;  %v883_v29 = vld [vmem:[%s1197_s1 + $0xc8] sm:$0xff]   ;;  %v884_v31 = vld [vmem:[%s1197_s1 + $0xd0] sm:$0xff]  }
   0xc   :  { %762 = vmatpush3.bf16.msra.mxu0 %v864_v9  ;;  %v885_v33 = vld [vmem:[%s1196_s0 + $0x8] ss:$16 sps:$4 sm:$0xff]   ;;  %v891_v34 = vld [vmem:[%s1196_s0 + $0x2c] ss:$16 sps:$4 sm:$0xff]  }
   0xd   :  { %763 = vmatprep.subr.bf16.mxu0 %v866_v11 }
   0xe   :  { %356 = vmatpush1.bf16.msra.mxu1 %v862_v10 }
   0xf   :  { %357 = vmatprep.subr.bf16.mxu1 %v934_v1 }
  0x10   :  { %764 = vmatpush3.bf16.msra.mxu0 %v867_v13 }
  0x11   :  { %765 = vmatprep.subr.bf16.mxu0 %v869_v14 }
  0x12   :  { %358 = vmatpush1.bf16.msra.mxu1 %v865_v12 }
  0x13   :  { %359 = vmatprep.subr.bf16.mxu1 %v934_v1 }
  0x14   :  { %766 = vmatpush3.bf16.msra.mxu0 %v870_v16 }
  0x15   :  { %767 = vmatprep.subr.bf16.mxu0 %v872_v17 }
  0x16   :  { %360 = vmatpush1.bf16.msra.mxu1 %v868_v15 }
  0x17   :  { %361 = vmatprep.subr.bf16.mxu1 %v934_v1 }
  0x18   :  { %768 = vmatpush3.bf16.msra.mxu0 %v873_v19 }
  0x19   :  { %769 = vmatprep.subr.bf16.mxu0 %v875_v20 }
  0x1a   :  { %362 = vmatpush1.bf16.msra.mxu1 %v871_v18 }
  0x1b   :  { %363 = vmatprep.subr.bf16.mxu1 %v934_v1 }
  0x1c   :  { %770 = vmatpush3.bf16.msra.mxu0 %v876_v22 }
  0x1d   :  { %771 = vmatprep.subr.bf16.mxu0 %v878_v23 }
  0x1e   :  { %364 = vmatpush1.bf16.msra.mxu1 %v874_v21 }
  0x1f   :  { %365 = vmatprep.subr.bf16.mxu1 %v934_v1 }
  0x20   :  { %772 = vmatpush3.bf16.msra.mxu0 %v879_v25 }
  0x22   :  { %366 = vmatpush1.bf16.msra.mxu1 %v877_v27 }
  0x23   :  { %367 = vmatprep.subr.bf16.mxu1 %v934_v1  ;;  %333 = vmatmul.mubr.bf16.vlgmr.msra.gmra.mrb[0].mxu0 %v880_v28 }
  0x24   :  { %340 = vmatprep.mubr.bf16.mxu0 %v888_v30 }
  0x26   :  { %368 = vmatpush1.bf16.msra.mxu1 %v883_v29 }
  0x27   :  { %369 = vmatprep.subr.bf16.mxu1 %v934_v1 }
  0x2a   :  { %370 = vmatpush1.bf16.msra.mxu1 %v884_v31 }
  0x2b   :  { %13 = vsyncpa [#allocation3], 0  ;;  %341 = vmatmul.mubr.bf16.gmra.mrb[4].mxu0 %v890_v32  ;;  %v893_v35 = vld [vmem:[%s1196_s0 + $0x28] ss:$16 sps:$4 sm:$0xff]   ;;  %v935_v36 = vmov 0.0   ;;  %vm936_vm1 = vmmov 0  }
  0x2c   :  { %805 = vmatprep.subr.bf16.mxu0 %v935_v36  ;;  %811 = vmatprep.subr.bf16.mxu1 %v935_v36  ;;  %v894_v37 = vld [vmem:[%s1200_s4] sm:$0xff]   ;;  %v895_v38 = vld [vmem:[%s1200_s4 + $0x8] sm:$0xff]   ;;  %v896_v39 = vld [vmem:[%s1200_s4 + $0x10] sm:$0xff]   ;;  %vm416_vm2 = vcmask 1043456   ;;  %vm412_vm3 = vcmask 64512   ;;  %s937_s20 = smov [#allocation2]  }
  0x2d   :  { %382 = vmatmul.mubr.bf16.vlgmr.msra.gmra.mrb[0].mxu1 %v885_v33  ;;  %807 = vmatprep.mubr.msk.bf16.mxu0 %vm936_vm1, %v935_v36  ;;  %v897_v40 = vld [vmem:[%s1200_s4 + $0x18] sm:$0xff]   ;;  %v898_v41 = vld [vmem:[%s1200_s4 + $0x20] sm:$0xff]   ;;  %v899_v42 = vld [vmem:[%s1200_s4 + $0x28] sm:$0xff]   ;;  %s692_s21 = sshll.u32 %s937_s20, 4  ;;  %s693_s21 = int_to_ptr.vmem [resolvable:$true] %s692_s21 }
  0x2e   :  { %736 = vmatprep.mubr.msk.bf16.mxu1 %vm293_vm0, %v891_v34  ;;  %812 = vmatpush3.bf16.msra.mxu1 %v894_v37  ;;  %v900_v43 = vld [vmem:[%s1200_s4 + $0x30] sm:$0xff]   ;;  %v737_v6 = vld [vmem:[%s1198_s2] ss:$0 sm:$0xff]  ;;  %v901_v13 = vld [vmem:[%s1200_s4 + $0x38] sm:$0xff]   ;;  %p915_p1 = scmp.lt.s32.totalorder %s693_s21, %s693_s21 }
  0x2f   :  { %813 = vmatprep.subr.bf16.mxu1 %v935_v36  ;;  %v410_v12 = vld [vmem:[%s1199_s3] sm:$0x1]  ;;  %v903_v15 = vld [vmem:[%s1202_s6 + $0x8] sm:$0xff]   ;;  %v904_v16 = vld [vmem:[%s1202_s6 + $0x10] sm:$0xff]  }
  0x30   :  { %v902_v14 = vld [vmem:[%s1202_s6] sm:$0xff]   ;;  %v905_v17 = vld [vmem:[%s1202_s6 + $0x18] sm:$0xff]   ;;  %v907_v19 = vld [vmem:[%s1202_s6 + $0x28] sm:$0xff]  }
  0x31   :  { %v906_v18 = vld [vmem:[%s1202_s6 + $0x20] sm:$0xff]   ;;  %v908_v25 = vld [vmem:[%s1202_s6 + $0x30] sm:$0xff]   ;;  %v909_v26 = vld [vmem:[%s1202_s6 + $0x38] sm:$0xff]  }
  0x32   :  { %814 = vmatpush3.bf16.msra.mxu1 %v895_v38  ;;  %v739_v27 = vld [vmem:[%s1201_s5] ss:$0 sm:$0xff]  ;;  %s910_s5 = scalar_lea.vmem %s693_s21, 32 }
  0x33   :  { %815 = vmatprep.subr.bf16.mxu1 %v935_v36  ;;  %p911_p0 = scmp.ne.s32.totalorder %s693_s21, %s910_s5  ;;  %p916_p2 = scmp.lt.s32.totalorder %s910_s5, %s910_s5 }
  0x35   :  { %390 = vmatmul.mubr.bf16.gmra.mrb[4].mxu1 %v893_v35  ;;  %v748_v35 = vld [vmem:[%s1203_s7] ss:$0 sm:$0xff]  ;;  %p917_p3 = por %p916_p2, %p915_p1 }
  0x36   :  { %827 = vmatprep.mubr.msk.bf16.mxu1 %vm936_vm1, %v935_v36  ;;  %816 = vmatpush3.bf16.msra.mxu1 %v896_v39 }
  0x37   :  { %817 = vmatprep.subr.bf16.mxu1 %v935_v36  ;;  %p918_p4 = pnand %p917_p3, %p911_p0 }
  0x3a   :  { %818 = vmatpush3.bf16.msra.mxu1 %v897_v40 }
  0x3b   :  { %819 = vmatprep.subr.bf16.mxu1 %v935_v36 }
  0x3e   :  { %820 = vmatpush3.bf16.msra.mxu1 %v898_v41 }
  0x3f   :  { %821 = vmatprep.subr.bf16.mxu1 %v935_v36 }
  0x42   :  { %822 = vmatpush3.bf16.msra.mxu1 %v899_v42 }
  0x43   :  { %823 = vmatprep.subr.bf16.mxu1 %v935_v36 }
  0x46   :  { %824 = vmatpush3.bf16.msra.mxu1 %v900_v43 }
  0x47   :  { %825 = vmatprep.subr.bf16.mxu1 %v935_v36 }
  0x4a   :  { %826 = vmatpush3.bf16.msra.mxu1 %v901_v13 }
  0xf6   :  { %v773_v44 = vpop.f32.mrb[0].mxu0 }
  0xf7   :  { %v774_v45 = vpop.f32.mrb[1].mxu0 }
  0xf8   :  { %v775_v46 = vadd.f32 %v774_v45, %v773_v44  ;;  %v776_v47 = vpop.f32.mrb[2].mxu0 }
  0xf9   :  { %v777_v48 = vpop.f32.mrb[3].mxu0 }
  0xfa   :  { %v778_v49 = vadd.f32 %v777_v48, %v776_v47 }
  0xfe   :  { %v779_v50 = vpop.f32.mrb[4].mxu0 }
  0xff   :  { %v780_v52 = vpop.f32.mrb[5].mxu0 }
 0x100   :  { %v383_v51 = vpop.f32.mrb[0].mxu1  ;;  %v781_v55 = vadd.f32 %v780_v52, %v779_v50  ;;  %v782_v56 = vpop.f32.mrb[6].mxu0 }
 0x101   :  { %v384_v53 = vadd.f32 %v775_v46, %v383_v51  ;;  %v385_v54 = vpop.f32.mrb[1].mxu1  ;;  %v783_v58 = vpop.f32.mrb[7].mxu0 }
 0x102   :  { %v386_v57 = vpop.f32.mrb[2].mxu1  ;;  %v784_v61 = vadd.f32 %v783_v58, %v782_v56 }
 0x103   :  { %v387_v59 = vadd.f32 %v778_v49, %v386_v57  ;;  %v388_v60 = vpop.f32.mrb[3].mxu1 }
 0x105   :  { %v398_v62 = vmax.f32 %v384_v53, %v387_v59 }
 0x108   :  { %v391_v63 = vpop.f32.mrb[4].mxu1 }
 0x109   :  { %v392_v0 = vadd.f32 %v781_v55, %v391_v63  ;;  %v393_v1 = vpop.f32.mrb[5].mxu1 }
 0x10a   :  { %v394_v2 = vpop.f32.mrb[6].mxu1 }
 0x10b   :  { %v395_v3 = vadd.f32 %v784_v61, %v394_v2  ;;  %v396_v4 = vpop.f32.mrb[7].mxu1 }
 0x10d   :  { %v399_v5 = vmax.f32 %v392_v0, %v395_v3 }
 0x10f   :  { %v400_v7 = vmax.f32 %v398_v62, %v399_v5 }
 0x111   :  { %v408_v8 = vadd.f32 %v737_v6, %v400_v7 }
 0x113   :  { %v409_v9 = vmax.f32 %v408_v8, 0.0 }
 0x115   :  { %v411_v10 = vpack.c.bf16 %v409_v9, %v409_v9 }
 0x117   :  { %v418_v11 = vsel %vm416_vm2, %v411_v10, 0 }
 0x118   :  { %806 = vmatpush3.bf16.msra.mxu0 %v418_v11 }
 0x119   :  { %831 = vmatprep.subr.bf16.mxu0 %v935_v36 }
 0x11b   :  { %808 = vmatmul.mubr.msk.bf16.vlgmr.msra.gmra.mrb[8].mxu0 %vm412_vm3, %v410_v12 }
 0x11c   :  { %847 = vmatprep.mubr.msk.bf16.mxu0 %vm936_vm1, %v935_v36  ;;  %832 = vmatpush3.bf16.msra.mxu0 %v902_v14 }
 0x11d   :  { %833 = vmatprep.subr.bf16.mxu0 %v935_v36 }
 0x120   :  { %834 = vmatpush3.bf16.msra.mxu0 %v903_v15 }
 0x121   :  { %835 = vmatprep.subr.bf16.mxu0 %v935_v36 }
 0x124   :  { %836 = vmatpush3.bf16.msra.mxu0 %v904_v16 }
 0x125   :  { %837 = vmatprep.subr.bf16.mxu0 %v935_v36 }
 0x128   :  { %838 = vmatpush3.bf16.msra.mxu0 %v905_v17 }
 0x129   :  { %839 = vmatprep.subr.bf16.mxu0 %v935_v36 }
 0x12c   :  { %840 = vmatpush3.bf16.msra.mxu0 %v906_v18 }
 0x12d   :  { %841 = vmatprep.subr.bf16.mxu0 %v935_v36 }
 0x130   :  { %842 = vmatpush3.bf16.msra.mxu0 %v907_v19 }
 0x131   :  { %843 = vmatprep.subr.bf16.mxu0 %v935_v36 }
 0x134   :  { %844 = vmatpush3.bf16.msra.mxu0 %v908_v25 }
 0x135   :  { %845 = vmatprep.subr.bf16.mxu0 %v935_v36 }
 0x138   :  { %846 = vmatpush3.bf16.msra.mxu0 %v909_v26 }
 0x1ee   :  { %v454_v20 = vpop.f32.mrb[8].mxu0 }
 0x1ef   :  { %v460_v21 = vpack.c.bf16 %v454_v20, %v454_v20  ;;  %v809_v22 = vpop.f32.mrb[9].mxu0 }
 0x1f0   :  { %v457_v23 = vpop.f32.mrb[10].mxu0 }
 0x1f1   :  { %v810_v24 = vpop.f32.mrb[11].mxu0  ;;  %828 = vmatmul.mubr.bf16.vlgmr.msra.gmra.mrb[8].mxu1 %v460_v21 }
 0x2c4   :  { %v566_v28 = vpop.f32.mrb[8].mxu1 }
 0x2c5   :  { %v567_v29 = vadd.f32 %v739_v27, %v566_v28  ;;  %v829_v30 = vpop.f32.mrb[9].mxu1 }
 0x2c6   :  { %v569_v31 = vpop.f32.mrb[10].mxu1 }
 0x2c7   :  { %v572_v32 = vmax.f32 %v567_v29, 0.0  ;;  %v830_v33 = vpop.f32.mrb[11].mxu1 }
 0x2c9   :  { %v573_v34 = vpack.c.bf16 %v572_v32, %v572_v32 }
 0x2cb   :  { %848 = vmatmul.mubr.bf16.vlgmr.msra.gmra.mrb[12].mxu0 %v573_v34 }
 0x39e   :  { %v679_v36 = vpop.f32.mrb[12].mxu0 }
 0x39f   :  { %v680_v37 = vadd.f32 %v748_v35, %v679_v36  ;;  %v849_v38 = vpop.f32.mrb[13].mxu0 }
 0x3a0   :  { %v682_v39 = vpop.f32.mrb[14].mxu0 }
 0x3a1   :  { %685 = vst [vmem:[#allocation2] sm:$0x3] %v680_v37  ;;  %v850_v40 = vpop.f32.mrb[15].mxu0 }
 0x3a2   :  { %921 = shalt.err (!%p918_p4)
}
 0x3a3   :  { %s922_s7 = scalar_lea.hbm %s1204_s8, 32 }
 0x3a4   :  { %p923_p5 = scmp.ne.s32.totalorder %s1204_s8, %s922_s7  ;;  %p926_p6 = scmp.lt.u32.totalorder %s922_s7, %s1204_s8 }
 0x3a6   :  { %p928_p7 = pnand %p926_p6, %p923_p5 }
 0x3a8   :  { %931 = shalt.err (!%p928_p7)
}
 0x3a9   :  { %695 = dma.vmem_to_hbm [thread:$0]  %s693_s21, 32, %s1204_s8, [#allocation3]  }
 0x3aa   :  { %932 = dma.done.wait [#allocation3], 32  }
 0x3ab   :  { %933 = vsyncadd [#allocation3], 4294967264 }
 0x3ac   :  { %699 = vsyncpa [#allocation3], 1 }

</bundles_post_ra>
